<compile_context>
chip_gen: v7x
topology: tpu7x:2x2x1
jax: 0.10.0
libtpu: 0.0.40
codegen_flags: <defaults>
</compile_context>

<pallas_src>
import functools
from math import ceil

import jax
import jax.numpy as jnp
from jax.experimental import pallas as pl
from jax.experimental.pallas import tpu as pltpu


# --------------------------------------------------------------------------- #
# Kernel
# --------------------------------------------------------------------------- #
def _spp_fused_kernel(x_ref, *refs, width, level_meta, order, plan):
    """One (batch, channel-tile) block of the fused SPP forward.

    x_ref : (1, tc, H*W)   NCHW block, H*W on lanes (read from HBM once)
    refs  : n_level output refs, each (1, oh*ow, tc)  + one VMEM scratch (H*W, tc)
    """
    n_lvl = len(level_meta)
    o_refs, xt_ref = refs[:n_lvl], refs[n_lvl]
    tc = x_ref.shape[1]

    # ---- one in-VMEM relayout per block: channels onto the lane axis --------
    # Chunked 2D transpose (<=128 channels at a time keeps every transpose
    # operand small and lane-aligned when C is 128-split).  After this, all
    # window maxima are full-lane-width and all stores are lane-dense rows.
    for g0 in range(0, tc, 128):
        g1 = min(tc, g0 + 128)
        xt_ref[:, g0:g1] = jnp.transpose(x_ref[0, g0:g1, :])

    pooled = {}  # level index -> {(i, j): (1, tc) lane-dense window max}

    # Levels are processed finest-first so coarser levels can reuse results.
    for lvl in order:
        k_h, k_w, oh, ow = level_meta[lvl]
        vals = {}
        if plan[lvl] is None:
            # Direct reduction from the feature map (finest level / fallback).
            # Per window: k_h contiguous (k_w, tc) slabs -> one cheap full-width
            # sublane reduce each, combined with elementwise VPU maxima.
            for i in range(oh):
                for j in range(ow):
                    acc = None
                    for r in range(k_h):
                        base = (i * k_h + r) * width + j * k_w
                        m = jnp.max(xt_ref[base:base + k_w, :], axis=0,
                                    keepdims=True)                  # (1, tc)
                        acc = m if acc is None else jnp.maximum(acc, m)
                    vals[(i, j)] = acc
        else:
            # Hierarchical reuse: this level's windows are exact unions of a
            # finer level's windows -> a few elementwise maxima, no XLU work.
            src, rh, rw = plan[lvl]
            fine = pooled[src]
            for i in range(oh):
                for j in range(ow):
                    acc = None
                    for a in range(rh):
                        for b2 in range(rw):
                            v = fine[(i * rh + a, j * rw + b2)]
                            acc = v if acc is None else jnp.maximum(acc, v)
                    vals[(i, j)] = acc
        pooled[lvl] = vals

        # Lane-dense (1, tc) row stores, rows in PyTorch (i, j) order.
        o_ref = o_refs[lvl]
        for i in range(oh):
            for j in range(ow):
                col = i * ow + j
                o_ref[0, col:col + 1, :] = vals[(i, j)].astype(o_ref.dtype)


# --------------------------------------------------------------------------- #
# Static planning / tiling helpers
# --------------------------------------------------------------------------- #
def _build_plan(level_meta):
    """Finest-first processing order + per-level derivation plan.

    plan[l] is None (reduce directly from the feature map) or (src, rh, rw):
    level l's windows are exact rh x rw unions of level `src`'s windows.
    """
    n = len(level_meta)
    order = sorted(range(n),
                   key=lambda l: level_meta[l][2] * level_meta[l][3],
                   reverse=True)
    plan = [None] * n
    done = []
    for l in order:
        k_h, k_w, oh, ow = level_meta[l]
        for s in done:
            sk_h, sk_w, soh, sow = level_meta[s]
            if (k_h % sk_h == 0 and k_w % sk_w == 0
                    and oh * (k_h // sk_h) <= soh
                    and ow * (k_w // sk_w) <= sow):
                plan[l] = (s, k_h // sk_h, k_w // sk_w)
                break
        done.append(l)
    return tuple(order), tuple(plan)


def _round_up(x, m):
    return ((x + m - 1) // m) * m


def _sublane_pack(dtype):
    # rows per sublane tile: 8 (4-byte), 16 (2-byte), 32 (1-byte)
    return max(8, 32 // jnp.dtype(dtype).itemsize)


def _block_vmem_bytes(tc, hw, s_list, dtype):
    """Real (sublane, 128)-padded VMEM footprint of one grid step."""
    it = jnp.dtype(dtype).itemsize
    pack = _sublane_pack(dtype)
    in_blk = _round_up(tc, pack) * _round_up(hw, 128) * it          # (1, tc, hw)
    out_blk = sum(_round_up(s, pack) * _round_up(tc, 128) * it for s in s_list)
    scratch = _round_up(hw, pack) * _round_up(tc, 128) * it         # (hw, tc)
    return 2 * in_blk + 2 * out_blk + scratch                       # 2x: double buffering


def _hw_budgets():
    """(padded block budget, vmem_limit cap, min grid steps) per generation."""
    kind = ""
    try:
        kind = jax.devices()[0].device_kind.lower()
    except Exception:
        pass
    if "v5" in kind or "v6" in kind:
        # 128 MiB physical VMEM, single TensorCore, HBM-bound: big blocks.
        return 24 << 20, 100 << 20, 4
    # Conservative default, sized for v7x-class parts (64 MiB VMEM, 2 TCs).
    return 12 << 20, 48 << 20, 8


def _pick_channel_tile(b, c, hw, s_list, dtype, block_budget, min_steps):
    """Largest 128-aligned divisor of C (or C itself) whose padded block fits,
    preferring tiles that still give >= min_steps grid steps (megacore +
    pipeline overlap); an even/large step count is free on v5e/v6e (grid is a
    loop) and feeds both TCs on v7x."""
    cands = sorted({c} | {t for t in range(128, c, 128) if c % t == 0},
                   reverse=True)
    fitting = [t for t in cands
               if _block_vmem_bytes(t, hw, s_list, dtype) <= block_budget]
    if not fitting:
        return cands[-1]
    stepped = [t for t in fitting if b * (c // t) >= min_steps]
    return stepped[0] if stepped else fitting[0]


# --------------------------------------------------------------------------- #
# Wrapper
# --------------------------------------------------------------------------- #
def spatial_pyramid_pooling_2d(x_nchw, levels=(1, 2, 4)):
    """Forward pass equivalent of SpatialPyramidPooling2d (MaxPool2d base).

    x_nchw: (B, C, H, W)  ->  (B, sum_over_levels(C * oh_l * ow_l))
    """
    b, c, h, w = x_nchw.shape
    hw = h * w

    meta = []
    for level in levels:
        k_h, k_w = ceil(h / level), ceil(w / level)
        oh, ow = h // k_h, w // k_w            # stride == kernel, padding == 0
        meta.append((k_h, k_w, oh, ow))
    meta = tuple(meta)
    s_list = [oh * ow for (_, _, oh, ow) in meta]

    order, plan = _build_plan(meta)

    block_budget, vmem_cap, min_steps = _hw_budgets()
    tc = _pick_channel_tile(b, c, hw, s_list, x_nchw.dtype, block_budget,
                            min_steps)
    need = _block_vmem_bytes(tc, hw, s_list, x_nchw.dtype)
    vmem_limit = int(min(vmem_cap, max(32 << 20, 2 * need)))
    vmem_limit = max(vmem_limit, need + (2 << 20))   # never below what we need

    # Free row-major reshape (no HBM pass): full H*W extent goes on lanes.
    x2 = x_nchw.reshape(b, c, hw)

    kernel = functools.partial(_spp_fused_kernel, width=w, level_meta=meta,
                               order=order, plan=plan)

    out_shape = tuple(jax.ShapeDtypeStruct((b, s, c), x_nchw.dtype)
                      for s in s_list)
    out_specs = [pl.BlockSpec((1, s, tc), lambda bi, ci: (bi, 0, ci))
                 for s in s_list]

    pooled = pl.pallas_call(
        kernel,
        out_shape=out_shape,
        grid_spec=pltpu.PrefetchScalarGridSpec(
            num_scalar_prefetch=0,
            grid=(b, c // tc),
            in_specs=[pl.BlockSpec((1, tc, hw), lambda bi, ci: (bi, ci, 0))],
            out_specs=out_specs,
            scratch_shapes=[pltpu.VMEM((hw, tc), x_nchw.dtype)],
        ),
        compiler_params=pltpu.CompilerParams(
            dimension_semantics=("parallel", "parallel"),
            vmem_limit_bytes=vmem_limit,
        ),
    )(x2)

    # PyTorch order: per level (B, s_l, C) -> (B, C, s_l) -> (B, C*s_l), then
    # concat over levels.  These ops touch only the tiny pooled slabs
    # (sum(s_l) * C elements) and XLA fuses them into one small copy.
    feats = [p.transpose(0, 2, 1).reshape(b, -1) for p in pooled]
    return jnp.concatenate(feats, axis=-1)


# --------------------------------------------------------------------------- #
# Pure-JAX reference + test
# --------------------------------------------------------------------------- #
def _reference(x_nchw, levels=(1, 2, 4)):
    b, c, h, w = x_nchw.shape
    feats = []
    for level in levels:
        k_h, k_w = ceil(h / level), ceil(w / level)
        pooled = jax.lax.reduce_window(
            x_nchw, -jnp.inf, jax.lax.max,
            window_dimensions=(1, 1, k_h, k_w),
            window_strides=(1, 1, k_h, k_w),
            padding="VALID",
        )
        feats.append(pooled.reshape(b, -1))
    return jnp.concatenate(feats, axis=-1)


if __name__ == "__main__":
    key = jax.random.PRNGKey(0)
    x = jax.random.normal(key, (2, 16, 16, 16), dtype=jnp.float32)  # NCHW
    levels = (1, 2, 4)

    out = spatial_pyramid_pooling_2d(x, levels)
    out = jax.block_until_ready(out)

    ref = _reference(x, levels)
    assert out.shape == ref.shape == (2, 16 * (1 + 4 + 16)), (out.shape, ref.shape)
    assert jnp.allclose(out, ref), "Pallas SPP output mismatch vs reference"

    print("KERNEL_OK")
</pallas_src>

<mosaic_0001>
module attributes {stable_mosaic.version = 11 : i64} {
  func.func @_spp_fused_kernel(%arg0: i32, %arg1: i32, %arg2: memref<1x16x256xf32, #tpu.memory_space<vmem>>, %arg3: memref<1x1x16xf32, #tpu.memory_space<vmem>>, %arg4: memref<1x4x16xf32, #tpu.memory_space<vmem>>, %arg5: memref<1x16x16xf32, #tpu.memory_space<vmem>>, %arg6: memref<256x16xf32, #tpu.memory_space<vmem>>) attributes {dimension_semantics = [#tpu.dimension_semantics<parallel>, #tpu.dimension_semantics<parallel>], iteration_bounds = array<i64: 2, 1>, scalar_prefetch = 0 : i64, scratch_operands = 1 : i64, tpu.core_type = #tpu.core_type<tc>, window_params = [{transform_indices = @transform_0, window_bounds = array<i64: 1, 16, 256>}, {transform_indices = @transform_1, window_bounds = array<i64: 1, 1, 16>}, {transform_indices = @transform_2, window_bounds = array<i64: 1, 4, 16>}, {transform_indices = @transform_3, window_bounds = array<i64: 1, 16, 16>}]} {
    %c0 = arith.constant 0 : index
    %c0_0 = arith.constant 0 : index
    %c0_1 = arith.constant 0 : index
    %0 = vector.load %arg2[%c0, %c0_0, %c0_1] : memref<1x16x256xf32, #tpu.memory_space<vmem>>, vector<1x16x256xf32>
    %1 = vector.shape_cast %0 : vector<1x16x256xf32> to vector<16x256xf32>
    %2 = tpu.transpose %1, [1, 0] : vector<16x256xf32> -> vector<256x16xf32>
    %c0_2 = arith.constant 0 : index
    %c0_3 = arith.constant 0 : index
    %3 = vector.load %arg6[%c0_2, %c0_3] : memref<256x16xf32, #tpu.memory_space<vmem>>, vector<256x16xf32>
    tpu.vector_store %arg6[%c0_2, %c0_3], %2 {strides = array<i32>} : memref<256x16xf32, #tpu.memory_space<vmem>>, vector<256x16xf32>,
    %c0_4 = arith.constant 0 : index
    %c0_5 = arith.constant 0 : index
    %4 = vector.load %arg6[%c0_4, %c0_5] : memref<256x16xf32, #tpu.memory_space<vmem>>, vector<4x16xf32>
    %cst = arith.constant dense<0xFF800000> : vector<16xf32>
    %5 = vector.multi_reduction <maximumf>, %4, %cst [0] : vector<4x16xf32> to vector<16xf32>
    %6 = vector.shape_cast %5 : vector<16xf32> to vector<1x16xf32>
    %c16 = arith.constant 16 : index
    %c0_6 = arith.constant 0 : index
    %7 = vector.load %arg6[%c16, %c0_6] : memref<256x16xf32, #tpu.memory_space<vmem>>, vector<4x16xf32>
    %cst_7 = arith.constant dense<0xFF800000> : vector<16xf32>
    %8 = vector.multi_reduction <maximumf>, %7, %cst_7 [0] : vector<4x16xf32> to vector<16xf32>
    %9 = vector.shape_cast %8 : vector<16xf32> to vector<1x16xf32>
    %10 = arith.maximumf %6, %9 : vector<1x16xf32>
    %c32 = arith.constant 32 : index
    %c0_8 = arith.constant 0 : index
    %11 = vector.load %arg6[%c32, %c0_8] : memref<256x16xf32, #tpu.memory_space<vmem>>, vector<4x16xf32>
    %cst_9 = arith.constant dense<0xFF800000> : vector<16xf32>
    %12 = vector.multi_reduction <maximumf>, %11, %cst_9 [0] : vector<4x16xf32> to vector<16xf32>
    %13 = vector.shape_cast %12 : vector<16xf32> to vector<1x16xf32>
    %14 = arith.maximumf %10, %13 : vector<1x16xf32>
    %c48 = arith.constant 48 : index
    %c0_10 = arith.constant 0 : index
    %15 = vector.load %arg6[%c48, %c0_10] : memref<256x16xf32, #tpu.memory_space<vmem>>, vector<4x16xf32>
    %cst_11 = arith.constant dense<0xFF800000> : vector<16xf32>
    %16 = vector.multi_reduction <maximumf>, %15, %cst_11 [0] : vector<4x16xf32> to vector<16xf32>
    %17 = vector.shape_cast %16 : vector<16xf32> to vector<1x16xf32>
    %18 = arith.maximumf %14, %17 : vector<1x16xf32>
    %c4 = arith.constant 4 : index
    %c0_12 = arith.constant 0 : index
    %19 = vector.load %arg6[%c4, %c0_12] : memref<256x16xf32, #tpu.memory_space<vmem>>, vector<4x16xf32>
    %cst_13 = arith.constant dense<0xFF800000> : vector<16xf32>
    %20 = vector.multi_reduction <maximumf>, %19, %cst_13 [0] : vector<4x16xf32> to vector<16xf32>
    %21 = vector.shape_cast %20 : vector<16xf32> to vector<1x16xf32>
    %c20 = arith.constant 20 : index
    %c0_14 = arith.constant 0 : index
    %22 = vector.load %arg6[%c20, %c0_14] : memref<256x16xf32, #tpu.memory_space<vmem>>, vector<4x16xf32>
    %cst_15 = arith.constant dense<0xFF800000> : vector<16xf32>
    %23 = vector.multi_reduction <maximumf>, %22, %cst_15 [0] : vector<4x16xf32> to vector<16xf32>
    %24 = vector.shape_cast %23 : vector<16xf32> to vector<1x16xf32>
    %25 = arith.maximumf %21, %24 : vector<1x16xf32>
    %c36 = arith.constant 36 : index
    %c0_16 = arith.constant 0 : index
    %26 = vector.load %arg6[%c36, %c0_16] : memref<256x16xf32, #tpu.memory_space<vmem>>, vector<4x16xf32>
    %cst_17 = arith.constant dense<0xFF800000> : vector<16xf32>
    %27 = vector.multi_reduction <maximumf>, %26, %cst_17 [0] : vector<4x16xf32> to vector<16xf32>
    %28 = vector.shape_cast %27 : vector<16xf32> to vector<1x16xf32>
    %29 = arith.maximumf %25, %28 : vector<1x16xf32>
    %c52 = arith.constant 52 : index
    %c0_18 = arith.constant 0 : index
    %30 = vector.load %arg6[%c52, %c0_18] : memref<256x16xf32, #tpu.memory_space<vmem>>, vector<4x16xf32>
    %cst_19 = arith.constant dense<0xFF800000> : vector<16xf32>
    %31 = vector.multi_reduction <maximumf>, %30, %cst_19 [0] : vector<4x16xf32> to vector<16xf32>
    %32 = vector.shape_cast %31 : vector<16xf32> to vector<1x16xf32>
    %33 = arith.maximumf %29, %32 : vector<1x16xf32>
    %c8 = arith.constant 8 : index
    %c0_20 = arith.constant 0 : index
    %34 = vector.load %arg6[%c8, %c0_20] : memref<256x16xf32, #tpu.memory_space<vmem>>, vector<4x16xf32>
    %cst_21 = arith.constant dense<0xFF800000> : vector<16xf32>
    %35 = vector.multi_reduction <maximumf>, %34, %cst_21 [0] : vector<4x16xf32> to vector<16xf32>
    %36 = vector.shape_cast %35 : vector<16xf32> to vector<1x16xf32>
    %c24 = arith.constant 24 : index
    %c0_22 = arith.constant 0 : index
    %37 = vector.load %arg6[%c24, %c0_22] : memref<256x16xf32, #tpu.memory_space<vmem>>, vector<4x16xf32>
    %cst_23 = arith.constant dense<0xFF800000> : vector<16xf32>
    %38 = vector.multi_reduction <maximumf>, %37, %cst_23 [0] : vector<4x16xf32> to vector<16xf32>
    %39 = vector.shape_cast %38 : vector<16xf32> to vector<1x16xf32>
    %40 = arith.maximumf %36, %39 : vector<1x16xf32>
    %c40 = arith.constant 40 : index
    %c0_24 = arith.constant 0 : index
    %41 = vector.load %arg6[%c40, %c0_24] : memref<256x16xf32, #tpu.memory_space<vmem>>, vector<4x16xf32>
    %cst_25 = arith.constant dense<0xFF800000> : vector<16xf32>
    %42 = vector.multi_reduction <maximumf>, %41, %cst_25 [0] : vector<4x16xf32> to vector<16xf32>
    %43 = vector.shape_cast %42 : vector<16xf32> to vector<1x16xf32>
    %44 = arith.maximumf %40, %43 : vector<1x16xf32>
    %c56 = arith.constant 56 : index
    %c0_26 = arith.constant 0 : index
    %45 = vector.load %arg6[%c56, %c0_26] : memref<256x16xf32, #tpu.memory_space<vmem>>, vector<4x16xf32>
    %cst_27 = arith.constant dense<0xFF800000> : vector<16xf32>
    %46 = vector.multi_reduction <maximumf>, %45, %cst_27 [0] : vector<4x16xf32> to vector<16xf32>
    %47 = vector.shape_cast %46 : vector<16xf32> to vector<1x16xf32>
    %48 = arith.maximumf %44, %47 : vector<1x16xf32>
    %c12 = arith.constant 12 : index
    %c0_28 = arith.constant 0 : index
    %49 = vector.load %arg6[%c12, %c0_28] : memref<256x16xf32, #tpu.memory_space<vmem>>, vector<4x16xf32>
    %cst_29 = arith.constant dense<0xFF800000> : vector<16xf32>
    %50 = vector.multi_reduction <maximumf>, %49, %cst_29 [0] : vector<4x16xf32> to vector<16xf32>
    %51 = vector.shape_cast %50 : vector<16xf32> to vector<1x16xf32>
    %c28 = arith.constant 28 : index
    %c0_30 = arith.constant 0 : index
    %52 = vector.load %arg6[%c28, %c0_30] : memref<256x16xf32, #tpu.memory_space<vmem>>, vector<4x16xf32>
    %cst_31 = arith.constant dense<0xFF800000> : vector<16xf32>
    %53 = vector.multi_reduction <maximumf>, %52, %cst_31 [0] : vector<4x16xf32> to vector<16xf32>
    %54 = vector.shape_cast %53 : vector<16xf32> to vector<1x16xf32>
    %55 = arith.maximumf %51, %54 : vector<1x16xf32>
    %c44 = arith.constant 44 : index
    %c0_32 = arith.constant 0 : index
    %56 = vector.load %arg6[%c44, %c0_32] : memref<256x16xf32, #tpu.memory_space<vmem>>, vector<4x16xf32>
    %cst_33 = arith.constant dense<0xFF800000> : vector<16xf32>
    %57 = vector.multi_reduction <maximumf>, %56, %cst_33 [0] : vector<4x16xf32> to vector<16xf32>
    %58 = vector.shape_cast %57 : vector<16xf32> to vector<1x16xf32>
    %59 = arith.maximumf %55, %58 : vector<1x16xf32>
    %c60 = arith.constant 60 : index
    %c0_34 = arith.constant 0 : index
    %60 = vector.load %arg6[%c60, %c0_34] : memref<256x16xf32, #tpu.memory_space<vmem>>, vector<4x16xf32>
    %cst_35 = arith.constant dense<0xFF800000> : vector<16xf32>
    %61 = vector.multi_reduction <maximumf>, %60, %cst_35 [0] : vector<4x16xf32> to vector<16xf32>
    %62 = vector.shape_cast %61 : vector<16xf32> to vector<1x16xf32>
    %63 = arith.maximumf %59, %62 : vector<1x16xf32>
    %c64 = arith.constant 64 : index
    %c0_36 = arith.constant 0 : index
    %64 = vector.load %arg6[%c64, %c0_36] : memref<256x16xf32, #tpu.memory_space<vmem>>, vector<4x16xf32>
    %cst_37 = arith.constant dense<0xFF800000> : vector<16xf32>
    %65 = vector.multi_reduction <maximumf>, %64, %cst_37 [0] : vector<4x16xf32> to vector<16xf32>
    %66 = vector.shape_cast %65 : vector<16xf32> to vector<1x16xf32>
    %c80 = arith.constant 80 : index
    %c0_38 = arith.constant 0 : index
    %67 = vector.load %arg6[%c80, %c0_38] : memref<256x16xf32, #tpu.memory_space<vmem>>, vector<4x16xf32>
    %cst_39 = arith.constant dense<0xFF800000> : vector<16xf32>
    %68 = vector.multi_reduction <maximumf>, %67, %cst_39 [0] : vector<4x16xf32> to vector<16xf32>
    %69 = vector.shape_cast %68 : vector<16xf32> to vector<1x16xf32>
    %70 = arith.maximumf %66, %69 : vector<1x16xf32>
    %c96 = arith.constant 96 : index
    %c0_40 = arith.constant 0 : index
    %71 = vector.load %arg6[%c96, %c0_40] : memref<256x16xf32, #tpu.memory_space<vmem>>, vector<4x16xf32>
    %cst_41 = arith.constant dense<0xFF800000> : vector<16xf32>
    %72 = vector.multi_reduction <maximumf>, %71, %cst_41 [0] : vector<4x16xf32> to vector<16xf32>
    %73 = vector.shape_cast %72 : vector<16xf32> to vector<1x16xf32>
    %74 = arith.maximumf %70, %73 : vector<1x16xf32>
    %c112 = arith.constant 112 : index
    %c0_42 = arith.constant 0 : index
    %75 = vector.load %arg6[%c112, %c0_42] : memref<256x16xf32, #tpu.memory_space<vmem>>, vector<4x16xf32>
    %cst_43 = arith.constant dense<0xFF800000> : vector<16xf32>
    %76 = vector.multi_reduction <maximumf>, %75, %cst_43 [0] : vector<4x16xf32> to vector<16xf32>
    %77 = vector.shape_cast %76 : vector<16xf32> to vector<1x16xf32>
    %78 = arith.maximumf %74, %77 : vector<1x16xf32>
    %c68 = arith.constant 68 : index
    %c0_44 = arith.constant 0 : index
    %79 = vector.load %arg6[%c68, %c0_44] : memref<256x16xf32, #tpu.memory_space<vmem>>, vector<4x16xf32>
    %cst_45 = arith.constant dense<0xFF800000> : vector<16xf32>
    %80 = vector.multi_reduction <maximumf>, %79, %cst_45 [0] : vector<4x16xf32> to vector<16xf32>
    %81 = vector.shape_cast %80 : vector<16xf32> to vector<1x16xf32>
    %c84 = arith.constant 84 : index
    %c0_46 = arith.constant 0 : index
    %82 = vector.load %arg6[%c84, %c0_46] : memref<256x16xf32, #tpu.memory_space<vmem>>, vector<4x16xf32>
    %cst_47 = arith.constant dense<0xFF800000> : vector<16xf32>
    %83 = vector.multi_reduction <maximumf>, %82, %cst_47 [0] : vector<4x16xf32> to vector<16xf32>
    %84 = vector.shape_cast %83 : vector<16xf32> to vector<1x16xf32>
    %85 = arith.maximumf %81, %84 : vector<1x16xf32>
    %c100 = arith.constant 100 : index
    %c0_48 = arith.constant 0 : index
    %86 = vector.load %arg6[%c100, %c0_48] : memref<256x16xf32, #tpu.memory_space<vmem>>, vector<4x16xf32>
    %cst_49 = arith.constant dense<0xFF800000> : vector<16xf32>
    %87 = vector.multi_reduction <maximumf>, %86, %cst_49 [0] : vector<4x16xf32> to vector<16xf32>
    %88 = vector.shape_cast %87 : vector<16xf32> to vector<1x16xf32>
    %89 = arith.maximumf %85, %88 : vector<1x16xf32>
    %c116 = arith.constant 116 : index
    %c0_50 = arith.constant 0 : index
    %90 = vector.load %arg6[%c116, %c0_50] : memref<256x16xf32, #tpu.memory_space<vmem>>, vector<4x16xf32>
    %cst_51 = arith.constant dense<0xFF800000> : vector<16xf32>
    %91 = vector.multi_reduction <maximumf>, %90, %cst_51 [0] : vector<4x16xf32> to vector<16xf32>
    %92 = vector.shape_cast %91 : vector<16xf32> to vector<1x16xf32>
    %93 = arith.maximumf %89, %92 : vector<1x16xf32>
    %c72 = arith.constant 72 : index
    %c0_52 = arith.constant 0 : index
    %94 = vector.load %arg6[%c72, %c0_52] : memref<256x16xf32, #tpu.memory_space<vmem>>, vector<4x16xf32>
    %cst_53 = arith.constant dense<0xFF800000> : vector<16xf32>
    %95 = vector.multi_reduction <maximumf>, %94, %cst_53 [0] : vector<4x16xf32> to vector<16xf32>
    %96 = vector.shape_cast %95 : vector<16xf32> to vector<1x16xf32>
    %c88 = arith.constant 88 : index
    %c0_54 = arith.constant 0 : index
    %97 = vector.load %arg6[%c88, %c0_54] : memref<256x16xf32, #tpu.memory_space<vmem>>, vector<4x16xf32>
    %cst_55 = arith.constant dense<0xFF800000> : vector<16xf32>
    %98 = vector.multi_reduction <maximumf>, %97, %cst_55 [0] : vector<4x16xf32> to vector<16xf32>
    %99 = vector.shape_cast %98 : vector<16xf32> to vector<1x16xf32>
    %100 = arith.maximumf %96, %99 : vector<1x16xf32>
    %c104 = arith.constant 104 : index
    %c0_56 = arith.constant 0 : index
    %101 = vector.load %arg6[%c104, %c0_56] : memref<256x16xf32, #tpu.memory_space<vmem>>, vector<4x16xf32>
    %cst_57 = arith.constant dense<0xFF800000> : vector<16xf32>
    %102 = vector.multi_reduction <maximumf>, %101, %cst_57 [0] : vector<4x16xf32> to vector<16xf32>
    %103 = vector.shape_cast %102 : vector<16xf32> to vector<1x16xf32>
    %104 = arith.maximumf %100, %103 : vector<1x16xf32>
    %c120 = arith.constant 120 : index
    %c0_58 = arith.constant 0 : index
    %105 = vector.load %arg6[%c120, %c0_58] : memref<256x16xf32, #tpu.memory_space<vmem>>, vector<4x16xf32>
    %cst_59 = arith.constant dense<0xFF800000> : vector<16xf32>
    %106 = vector.multi_reduction <maximumf>, %105, %cst_59 [0] : vector<4x16xf32> to vector<16xf32>
    %107 = vector.shape_cast %106 : vector<16xf32> to vector<1x16xf32>
    %108 = arith.maximumf %104, %107 : vector<1x16xf32>
    %c76 = arith.constant 76 : index
    %c0_60 = arith.constant 0 : index
    %109 = vector.load %arg6[%c76, %c0_60] : memref<256x16xf32, #tpu.memory_space<vmem>>, vector<4x16xf32>
    %cst_61 = arith.constant dense<0xFF800000> : vector<16xf32>
    %110 = vector.multi_reduction <maximumf>, %109, %cst_61 [0] : vector<4x16xf32> to vector<16xf32>
    %111 = vector.shape_cast %110 : vector<16xf32> to vector<1x16xf32>
    %c92 = arith.constant 92 : index
    %c0_62 = arith.constant 0 : index
    %112 = vector.load %arg6[%c92, %c0_62] : memref<256x16xf32, #tpu.memory_space<vmem>>, vector<4x16xf32>
    %cst_63 = arith.constant dense<0xFF800000> : vector<16xf32>
    %113 = vector.multi_reduction <maximumf>, %112, %cst_63 [0] : vector<4x16xf32> to vector<16xf32>
    %114 = vector.shape_cast %113 : vector<16xf32> to vector<1x16xf32>
    %115 = arith.maximumf %111, %114 : vector<1x16xf32>
    %c108 = arith.constant 108 : index
    %c0_64 = arith.constant 0 : index
    %116 = vector.load %arg6[%c108, %c0_64] : memref<256x16xf32, #tpu.memory_space<vmem>>, vector<4x16xf32>
    %cst_65 = arith.constant dense<0xFF800000> : vector<16xf32>
    %117 = vector.multi_reduction <maximumf>, %116, %cst_65 [0] : vector<4x16xf32> to vector<16xf32>
    %118 = vector.shape_cast %117 : vector<16xf32> to vector<1x16xf32>
    %119 = arith.maximumf %115, %118 : vector<1x16xf32>
    %c124 = arith.constant 124 : index
    %c0_66 = arith.constant 0 : index
    %120 = vector.load %arg6[%c124, %c0_66] : memref<256x16xf32, #tpu.memory_space<vmem>>, vector<4x16xf32>
    %cst_67 = arith.constant dense<0xFF800000> : vector<16xf32>
    %121 = vector.multi_reduction <maximumf>, %120, %cst_67 [0] : vector<4x16xf32> to vector<16xf32>
    %122 = vector.shape_cast %121 : vector<16xf32> to vector<1x16xf32>
    %123 = arith.maximumf %119, %122 : vector<1x16xf32>
    %c128 = arith.constant 128 : index
    %c0_68 = arith.constant 0 : index
    %124 = vector.load %arg6[%c128, %c0_68] : memref<256x16xf32, #tpu.memory_space<vmem>>, vector<4x16xf32>
    %cst_69 = arith.constant dense<0xFF800000> : vector<16xf32>
    %125 = vector.multi_reduction <maximumf>, %124, %cst_69 [0] : vector<4x16xf32> to vector<16xf32>
    %126 = vector.shape_cast %125 : vector<16xf32> to vector<1x16xf32>
    %c144 = arith.constant 144 : index
    %c0_70 = arith.constant 0 : index
    %127 = vector.load %arg6[%c144, %c0_70] : memref<256x16xf32, #tpu.memory_space<vmem>>, vector<4x16xf32>
    %cst_71 = arith.constant dense<0xFF800000> : vector<16xf32>
    %128 = vector.multi_reduction <maximumf>, %127, %cst_71 [0] : vector<4x16xf32> to vector<16xf32>
    %129 = vector.shape_cast %128 : vector<16xf32> to vector<1x16xf32>
    %130 = arith.maximumf %126, %129 : vector<1x16xf32>
    %c160 = arith.constant 160 : index
    %c0_72 = arith.constant 0 : index
    %131 = vector.load %arg6[%c160, %c0_72] : memref<256x16xf32, #tpu.memory_space<vmem>>, vector<4x16xf32>
    %cst_73 = arith.constant dense<0xFF800000> : vector<16xf32>
    %132 = vector.multi_reduction <maximumf>, %131, %cst_73 [0] : vector<4x16xf32> to vector<16xf32>
    %133 = vector.shape_cast %132 : vector<16xf32> to vector<1x16xf32>
    %134 = arith.maximumf %130, %133 : vector<1x16xf32>
    %c176 = arith.constant 176 : index
    %c0_74 = arith.constant 0 : index
    %135 = vector.load %arg6[%c176, %c0_74] : memref<256x16xf32, #tpu.memory_space<vmem>>, vector<4x16xf32>
    %cst_75 = arith.constant dense<0xFF800000> : vector<16xf32>
    %136 = vector.multi_reduction <maximumf>, %135, %cst_75 [0] : vector<4x16xf32> to vector<16xf32>
    %137 = vector.shape_cast %136 : vector<16xf32> to vector<1x16xf32>
    %138 = arith.maximumf %134, %137 : vector<1x16xf32>
    %c132 = arith.constant 132 : index
    %c0_76 = arith.constant 0 : index
    %139 = vector.load %arg6[%c132, %c0_76] : memref<256x16xf32, #tpu.memory_space<vmem>>, vector<4x16xf32>
    %cst_77 = arith.constant dense<0xFF800000> : vector<16xf32>
    %140 = vector.multi_reduction <maximumf>, %139, %cst_77 [0] : vector<4x16xf32> to vector<16xf32>
    %141 = vector.shape_cast %140 : vector<16xf32> to vector<1x16xf32>
    %c148 = arith.constant 148 : index
    %c0_78 = arith.constant 0 : index
    %142 = vector.load %arg6[%c148, %c0_78] : memref<256x16xf32, #tpu.memory_space<vmem>>, vector<4x16xf32>
    %cst_79 = arith.constant dense<0xFF800000> : vector<16xf32>
    %143 = vector.multi_reduction <maximumf>, %142, %cst_79 [0] : vector<4x16xf32> to vector<16xf32>
    %144 = vector.shape_cast %143 : vector<16xf32> to vector<1x16xf32>
    %145 = arith.maximumf %141, %144 : vector<1x16xf32>
    %c164 = arith.constant 164 : index
    %c0_80 = arith.constant 0 : index
    %146 = vector.load %arg6[%c164, %c0_80] : memref<256x16xf32, #tpu.memory_space<vmem>>, vector<4x16xf32>
    %cst_81 = arith.constant dense<0xFF800000> : vector<16xf32>
    %147 = vector.multi_reduction <maximumf>, %146, %cst_81 [0] : vector<4x16xf32> to vector<16xf32>
    %148 = vector.shape_cast %147 : vector<16xf32> to vector<1x16xf32>
    %149 = arith.maximumf %145, %148 : vector<1x16xf32>
    %c180 = arith.constant 180 : index
    %c0_82 = arith.constant 0 : index
    %150 = vector.load %arg6[%c180, %c0_82] : memref<256x16xf32, #tpu.memory_space<vmem>>, vector<4x16xf32>
    %cst_83 = arith.constant dense<0xFF800000> : vector<16xf32>
    %151 = vector.multi_reduction <maximumf>, %150, %cst_83 [0] : vector<4x16xf32> to vector<16xf32>
    %152 = vector.shape_cast %151 : vector<16xf32> to vector<1x16xf32>
    %153 = arith.maximumf %149, %152 : vector<1x16xf32>
    %c136 = arith.constant 136 : index
    %c0_84 = arith.constant 0 : index
    %154 = vector.load %arg6[%c136, %c0_84] : memref<256x16xf32, #tpu.memory_space<vmem>>, vector<4x16xf32>
    %cst_85 = arith.constant dense<0xFF800000> : vector<16xf32>
    %155 = vector.multi_reduction <maximumf>, %154, %cst_85 [0] : vector<4x16xf32> to vector<16xf32>
    %156 = vector.shape_cast %155 : vector<16xf32> to vector<1x16xf32>
    %c152 = arith.constant 152 : index
    %c0_86 = arith.constant 0 : index
    %157 = vector.load %arg6[%c152, %c0_86] : memref<256x16xf32, #tpu.memory_space<vmem>>, vector<4x16xf32>
    %cst_87 = arith.constant dense<0xFF800000> : vector<16xf32>
    %158 = vector.multi_reduction <maximumf>, %157, %cst_87 [0] : vector<4x16xf32> to vector<16xf32>
    %159 = vector.shape_cast %158 : vector<16xf32> to vector<1x16xf32>
    %160 = arith.maximumf %156, %159 : vector<1x16xf32>
    %c168 = arith.constant 168 : index
    %c0_88 = arith.constant 0 : index
    %161 = vector.load %arg6[%c168, %c0_88] : memref<256x16xf32, #tpu.memory_space<vmem>>, vector<4x16xf32>
    %cst_89 = arith.constant dense<0xFF800000> : vector<16xf32>
    %162 = vector.multi_reduction <maximumf>, %161, %cst_89 [0] : vector<4x16xf32> to vector<16xf32>
    %163 = vector.shape_cast %162 : vector<16xf32> to vector<1x16xf32>
    %164 = arith.maximumf %160, %163 : vector<1x16xf32>
    %c184 = arith.constant 184 : index
    %c0_90 = arith.constant 0 : index
    %165 = vector.load %arg6[%c184, %c0_90] : memref<256x16xf32, #tpu.memory_space<vmem>>, vector<4x16xf32>
    %cst_91 = arith.constant dense<0xFF800000> : vector<16xf32>
    %166 = vector.multi_reduction <maximumf>, %165, %cst_91 [0] : vector<4x16xf32> to vector<16xf32>
    %167 = vector.shape_cast %166 : vector<16xf32> to vector<1x16xf32>
    %168 = arith.maximumf %164, %167 : vector<1x16xf32>
    %c140 = arith.constant 140 : index
    %c0_92 = arith.constant 0 : index
    %169 = vector.load %arg6[%c140, %c0_92] : memref<256x16xf32, #tpu.memory_space<vmem>>, vector<4x16xf32>
    %cst_93 = arith.constant dense<0xFF800000> : vector<16xf32>
    %170 = vector.multi_reduction <maximumf>, %169, %cst_93 [0] : vector<4x16xf32> to vector<16xf32>
    %171 = vector.shape_cast %170 : vector<16xf32> to vector<1x16xf32>
    %c156 = arith.constant 156 : index
    %c0_94 = arith.constant 0 : index
    %172 = vector.load %arg6[%c156, %c0_94] : memref<256x16xf32, #tpu.memory_space<vmem>>, vector<4x16xf32>
    %cst_95 = arith.constant dense<0xFF800000> : vector<16xf32>
    %173 = vector.multi_reduction <maximumf>, %172, %cst_95 [0] : vector<4x16xf32> to vector<16xf32>
    %174 = vector.shape_cast %173 : vector<16xf32> to vector<1x16xf32>
    %175 = arith.maximumf %171, %174 : vector<1x16xf32>
    %c172 = arith.constant 172 : index
    %c0_96 = arith.constant 0 : index
    %176 = vector.load %arg6[%c172, %c0_96] : memref<256x16xf32, #tpu.memory_space<vmem>>, vector<4x16xf32>
    %cst_97 = arith.constant dense<0xFF800000> : vector<16xf32>
    %177 = vector.multi_reduction <maximumf>, %176, %cst_97 [0] : vector<4x16xf32> to vector<16xf32>
    %178 = vector.shape_cast %177 : vector<16xf32> to vector<1x16xf32>
    %179 = arith.maximumf %175, %178 : vector<1x16xf32>
    %c188 = arith.constant 188 : index
    %c0_98 = arith.constant 0 : index
    %180 = vector.load %arg6[%c188, %c0_98] : memref<256x16xf32, #tpu.memory_space<vmem>>, vector<4x16xf32>
    %cst_99 = arith.constant dense<0xFF800000> : vector<16xf32>
    %181 = vector.multi_reduction <maximumf>, %180, %cst_99 [0] : vector<4x16xf32> to vector<16xf32>
    %182 = vector.shape_cast %181 : vector<16xf32> to vector<1x16xf32>
    %183 = arith.maximumf %179, %182 : vector<1x16xf32>
    %c192 = arith.constant 192 : index
    %c0_100 = arith.constant 0 : index
    %184 = vector.load %arg6[%c192, %c0_100] : memref<256x16xf32, #tpu.memory_space<vmem>>, vector<4x16xf32>
    %cst_101 = arith.constant dense<0xFF800000> : vector<16xf32>
    %185 = vector.multi_reduction <maximumf>, %184, %cst_101 [0] : vector<4x16xf32> to vector<16xf32>
    %186 = vector.shape_cast %185 : vector<16xf32> to vector<1x16xf32>
    %c208 = arith.constant 208 : index
    %c0_102 = arith.constant 0 : index
    %187 = vector.load %arg6[%c208, %c0_102] : memref<256x16xf32, #tpu.memory_space<vmem>>, vector<4x16xf32>
    %cst_103 = arith.constant dense<0xFF800000> : vector<16xf32>
    %188 = vector.multi_reduction <maximumf>, %187, %cst_103 [0] : vector<4x16xf32> to vector<16xf32>
    %189 = vector.shape_cast %188 : vector<16xf32> to vector<1x16xf32>
    %190 = arith.maximumf %186, %189 : vector<1x16xf32>
    %c224 = arith.constant 224 : index
    %c0_104 = arith.constant 0 : index
    %191 = vector.load %arg6[%c224, %c0_104] : memref<256x16xf32, #tpu.memory_space<vmem>>, vector<4x16xf32>
    %cst_105 = arith.constant dense<0xFF800000> : vector<16xf32>
    %192 = vector.multi_reduction <maximumf>, %191, %cst_105 [0] : vector<4x16xf32> to vector<16xf32>
    %193 = vector.shape_cast %192 : vector<16xf32> to vector<1x16xf32>
    %194 = arith.maximumf %190, %193 : vector<1x16xf32>
    %c240 = arith.constant 240 : index
    %c0_106 = arith.constant 0 : index
    %195 = vector.load %arg6[%c240, %c0_106] : memref<256x16xf32, #tpu.memory_space<vmem>>, vector<4x16xf32>
    %cst_107 = arith.constant dense<0xFF800000> : vector<16xf32>
    %196 = vector.multi_reduction <maximumf>, %195, %cst_107 [0] : vector<4x16xf32> to vector<16xf32>
    %197 = vector.shape_cast %196 : vector<16xf32> to vector<1x16xf32>
    %198 = arith.maximumf %194, %197 : vector<1x16xf32>
    %c196 = arith.constant 196 : index
    %c0_108 = arith.constant 0 : index
    %199 = vector.load %arg6[%c196, %c0_108] : memref<256x16xf32, #tpu.memory_space<vmem>>, vector<4x16xf32>
    %cst_109 = arith.constant dense<0xFF800000> : vector<16xf32>
    %200 = vector.multi_reduction <maximumf>, %199, %cst_109 [0] : vector<4x16xf32> to vector<16xf32>
    %201 = vector.shape_cast %200 : vector<16xf32> to vector<1x16xf32>
    %c212 = arith.constant 212 : index
    %c0_110 = arith.constant 0 : index
    %202 = vector.load %arg6[%c212, %c0_110] : memref<256x16xf32, #tpu.memory_space<vmem>>, vector<4x16xf32>
    %cst_111 = arith.constant dense<0xFF800000> : vector<16xf32>
    %203 = vector.multi_reduction <maximumf>, %202, %cst_111 [0] : vector<4x16xf32> to vector<16xf32>
    %204 = vector.shape_cast %203 : vector<16xf32> to vector<1x16xf32>
    %205 = arith.maximumf %201, %204 : vector<1x16xf32>
    %c228 = arith.constant 228 : index
    %c0_112 = arith.constant 0 : index
    %206 = vector.load %arg6[%c228, %c0_112] : memref<256x16xf32, #tpu.memory_space<vmem>>, vector<4x16xf32>
    %cst_113 = arith.constant dense<0xFF800000> : vector<16xf32>
    %207 = vector.multi_reduction <maximumf>, %206, %cst_113 [0] : vector<4x16xf32> to vector<16xf32>
    %208 = vector.shape_cast %207 : vector<16xf32> to vector<1x16xf32>
    %209 = arith.maximumf %205, %208 : vector<1x16xf32>
    %c244 = arith.constant 244 : index
    %c0_114 = arith.constant 0 : index
    %210 = vector.load %arg6[%c244, %c0_114] : memref<256x16xf32, #tpu.memory_space<vmem>>, vector<4x16xf32>
    %cst_115 = arith.constant dense<0xFF800000> : vector<16xf32>
    %211 = vector.multi_reduction <maximumf>, %210, %cst_115 [0] : vector<4x16xf32> to vector<16xf32>
    %212 = vector.shape_cast %211 : vector<16xf32> to vector<1x16xf32>
    %213 = arith.maximumf %209, %212 : vector<1x16xf32>
    %c200 = arith.constant 200 : index
    %c0_116 = arith.constant 0 : index
    %214 = vector.load %arg6[%c200, %c0_116] : memref<256x16xf32, #tpu.memory_space<vmem>>, vector<4x16xf32>
    %cst_117 = arith.constant dense<0xFF800000> : vector<16xf32>
    %215 = vector.multi_reduction <maximumf>, %214, %cst_117 [0] : vector<4x16xf32> to vector<16xf32>
    %216 = vector.shape_cast %215 : vector<16xf32> to vector<1x16xf32>
    %c216 = arith.constant 216 : index
    %c0_118 = arith.constant 0 : index
    %217 = vector.load %arg6[%c216, %c0_118] : memref<256x16xf32, #tpu.memory_space<vmem>>, vector<4x16xf32>
    %cst_119 = arith.constant dense<0xFF800000> : vector<16xf32>
    %218 = vector.multi_reduction <maximumf>, %217, %cst_119 [0] : vector<4x16xf32> to vector<16xf32>
    %219 = vector.shape_cast %218 : vector<16xf32> to vector<1x16xf32>
    %220 = arith.maximumf %216, %219 : vector<1x16xf32>
    %c232 = arith.constant 232 : index
    %c0_120 = arith.constant 0 : index
    %221 = vector.load %arg6[%c232, %c0_120] : memref<256x16xf32, #tpu.memory_space<vmem>>, vector<4x16xf32>
    %cst_121 = arith.constant dense<0xFF800000> : vector<16xf32>
    %222 = vector.multi_reduction <maximumf>, %221, %cst_121 [0] : vector<4x16xf32> to vector<16xf32>
    %223 = vector.shape_cast %222 : vector<16xf32> to vector<1x16xf32>
    %224 = arith.maximumf %220, %223 : vector<1x16xf32>
    %c248 = arith.constant 248 : index
    %c0_122 = arith.constant 0 : index
    %225 = vector.load %arg6[%c248, %c0_122] : memref<256x16xf32, #tpu.memory_space<vmem>>, vector<4x16xf32>
    %cst_123 = arith.constant dense<0xFF800000> : vector<16xf32>
    %226 = vector.multi_reduction <maximumf>, %225, %cst_123 [0] : vector<4x16xf32> to vector<16xf32>
    %227 = vector.shape_cast %226 : vector<16xf32> to vector<1x16xf32>
    %228 = arith.maximumf %224, %227 : vector<1x16xf32>
    %c204 = arith.constant 204 : index
    %c0_124 = arith.constant 0 : index
    %229 = vector.load %arg6[%c204, %c0_124] : memref<256x16xf32, #tpu.memory_space<vmem>>, vector<4x16xf32>
    %cst_125 = arith.constant dense<0xFF800000> : vector<16xf32>
    %230 = vector.multi_reduction <maximumf>, %229, %cst_125 [0] : vector<4x16xf32> to vector<16xf32>
    %231 = vector.shape_cast %230 : vector<16xf32> to vector<1x16xf32>
    %c220 = arith.constant 220 : index
    %c0_126 = arith.constant 0 : index
    %232 = vector.load %arg6[%c220, %c0_126] : memref<256x16xf32, #tpu.memory_space<vmem>>, vector<4x16xf32>
    %cst_127 = arith.constant dense<0xFF800000> : vector<16xf32>
    %233 = vector.multi_reduction <maximumf>, %232, %cst_127 [0] : vector<4x16xf32> to vector<16xf32>
    %234 = vector.shape_cast %233 : vector<16xf32> to vector<1x16xf32>
    %235 = arith.maximumf %231, %234 : vector<1x16xf32>
    %c236 = arith.constant 236 : index
    %c0_128 = arith.constant 0 : index
    %236 = vector.load %arg6[%c236, %c0_128] : memref<256x16xf32, #tpu.memory_space<vmem>>, vector<4x16xf32>
    %cst_129 = arith.constant dense<0xFF800000> : vector<16xf32>
    %237 = vector.multi_reduction <maximumf>, %236, %cst_129 [0] : vector<4x16xf32> to vector<16xf32>
    %238 = vector.shape_cast %237 : vector<16xf32> to vector<1x16xf32>
    %239 = arith.maximumf %235, %238 : vector<1x16xf32>
    %c252 = arith.constant 252 : index
    %c0_130 = arith.constant 0 : index
    %240 = vector.load %arg6[%c252, %c0_130] : memref<256x16xf32, #tpu.memory_space<vmem>>, vector<4x16xf32>
    %cst_131 = arith.constant dense<0xFF800000> : vector<16xf32>
    %241 = vector.multi_reduction <maximumf>, %240, %cst_131 [0] : vector<4x16xf32> to vector<16xf32>
    %242 = vector.shape_cast %241 : vector<16xf32> to vector<1x16xf32>
    %243 = arith.maximumf %239, %242 : vector<1x16xf32>
    %c0_132 = arith.constant 0 : index
    %c0_133 = arith.constant 0 : index
    %c0_134 = arith.constant 0 : index
    %244 = vector.load %arg5[%c0_132, %c0_133, %c0_134] : memref<1x16x16xf32, #tpu.memory_space<vmem>>, vector<1x1x16xf32>
    %245 = vector.shape_cast %244 : vector<1x1x16xf32> to vector<1x16xf32>
    %246 = vector.shape_cast %18 : vector<1x16xf32> to vector<1x1x16xf32>
    tpu.vector_store %arg5[%c0_132, %c0_133, %c0_134], %246 {strides = array<i32>} : memref<1x16x16xf32, #tpu.memory_space<vmem>>, vector<1x1x16xf32>,
    %c0_135 = arith.constant 0 : index
    %c1 = arith.constant 1 : index
    %c0_136 = arith.constant 0 : index
    %247 = vector.load %arg5[%c0_135, %c1, %c0_136] : memref<1x16x16xf32, #tpu.memory_space<vmem>>, vector<1x1x16xf32>
    %248 = vector.shape_cast %247 : vector<1x1x16xf32> to vector<1x16xf32>
    %249 = vector.shape_cast %33 : vector<1x16xf32> to vector<1x1x16xf32>
    tpu.vector_store %arg5[%c0_135, %c1, %c0_136], %249 {strides = array<i32>} : memref<1x16x16xf32, #tpu.memory_space<vmem>>, vector<1x1x16xf32>,
    %c0_137 = arith.constant 0 : index
    %c2 = arith.constant 2 : index
    %c0_138 = arith.constant 0 : index
    %250 = vector.load %arg5[%c0_137, %c2, %c0_138] : memref<1x16x16xf32, #tpu.memory_space<vmem>>, vector<1x1x16xf32>
    %251 = vector.shape_cast %250 : vector<1x1x16xf32> to vector<1x16xf32>
    %252 = vector.shape_cast %48 : vector<1x16xf32> to vector<1x1x16xf32>
    tpu.vector_store %arg5[%c0_137, %c2, %c0_138], %252 {strides = array<i32>} : memref<1x16x16xf32, #tpu.memory_space<vmem>>, vector<1x1x16xf32>,
    %c0_139 = arith.constant 0 : index
    %c3 = arith.constant 3 : index
    %c0_140 = arith.constant 0 : index
    %253 = vector.load %arg5[%c0_139, %c3, %c0_140] : memref<1x16x16xf32, #tpu.memory_space<vmem>>, vector<1x1x16xf32>
    %254 = vector.shape_cast %253 : vector<1x1x16xf32> to vector<1x16xf32>
    %255 = vector.shape_cast %63 : vector<1x16xf32> to vector<1x1x16xf32>
    tpu.vector_store %arg5[%c0_139, %c3, %c0_140], %255 {strides = array<i32>} : memref<1x16x16xf32, #tpu.memory_space<vmem>>, vector<1x1x16xf32>,
    %c0_141 = arith.constant 0 : index
    %c4_142 = arith.constant 4 : index
    %c0_143 = arith.constant 0 : index
    %256 = vector.load %arg5[%c0_141, %c4_142, %c0_143] : memref<1x16x16xf32, #tpu.memory_space<vmem>>, vector<1x1x16xf32>
    %257 = vector.shape_cast %256 : vector<1x1x16xf32> to vector<1x16xf32>
    %258 = vector.shape_cast %78 : vector<1x16xf32> to vector<1x1x16xf32>
    tpu.vector_store %arg5[%c0_141, %c4_142, %c0_143], %258 {strides = array<i32>} : memref<1x16x16xf32, #tpu.memory_space<vmem>>, vector<1x1x16xf32>,
    %c0_144 = arith.constant 0 : index
    %c5 = arith.constant 5 : index
    %c0_145 = arith.constant 0 : index
    %259 = vector.load %arg5[%c0_144, %c5, %c0_145] : memref<1x16x16xf32, #tpu.memory_space<vmem>>, vector<1x1x16xf32>
    %260 = vector.shape_cast %259 : vector<1x1x16xf32> to vector<1x16xf32>
    %261 = vector.shape_cast %93 : vector<1x16xf32> to vector<1x1x16xf32>
    tpu.vector_store %arg5[%c0_144, %c5, %c0_145], %261 {strides = array<i32>} : memref<1x16x16xf32, #tpu.memory_space<vmem>>, vector<1x1x16xf32>,
    %c0_146 = arith.constant 0 : index
    %c6 = arith.constant 6 : index
    %c0_147 = arith.constant 0 : index
    %262 = vector.load %arg5[%c0_146, %c6, %c0_147] : memref<1x16x16xf32, #tpu.memory_space<vmem>>, vector<1x1x16xf32>
    %263 = vector.shape_cast %262 : vector<1x1x16xf32> to vector<1x16xf32>
    %264 = vector.shape_cast %108 : vector<1x16xf32> to vector<1x1x16xf32>
    tpu.vector_store %arg5[%c0_146, %c6, %c0_147], %264 {strides = array<i32>} : memref<1x16x16xf32, #tpu.memory_space<vmem>>, vector<1x1x16xf32>,
    %c0_148 = arith.constant 0 : index
    %c7 = arith.constant 7 : index
    %c0_149 = arith.constant 0 : index
    %265 = vector.load %arg5[%c0_148, %c7, %c0_149] : memref<1x16x16xf32, #tpu.memory_space<vmem>>, vector<1x1x16xf32>
    %266 = vector.shape_cast %265 : vector<1x1x16xf32> to vector<1x16xf32>
    %267 = vector.shape_cast %123 : vector<1x16xf32> to vector<1x1x16xf32>
    tpu.vector_store %arg5[%c0_148, %c7, %c0_149], %267 {strides = array<i32>} : memref<1x16x16xf32, #tpu.memory_space<vmem>>, vector<1x1x16xf32>,
    %c0_150 = arith.constant 0 : index
    %c8_151 = arith.constant 8 : index
    %c0_152 = arith.constant 0 : index
    %268 = vector.load %arg5[%c0_150, %c8_151, %c0_152] : memref<1x16x16xf32, #tpu.memory_space<vmem>>, vector<1x1x16xf32>
    %269 = vector.shape_cast %268 : vector<1x1x16xf32> to vector<1x16xf32>
    %270 = vector.shape_cast %138 : vector<1x16xf32> to vector<1x1x16xf32>
    tpu.vector_store %arg5[%c0_150, %c8_151, %c0_152], %270 {strides = array<i32>} : memref<1x16x16xf32, #tpu.memory_space<vmem>>, vector<1x1x16xf32>,
    %c0_153 = arith.constant 0 : index
    %c9 = arith.constant 9 : index
    %c0_154 = arith.constant 0 : index
    %271 = vector.load %arg5[%c0_153, %c9, %c0_154] : memref<1x16x16xf32, #tpu.memory_space<vmem>>, vector<1x1x16xf32>
    %272 = vector.shape_cast %271 : vector<1x1x16xf32> to vector<1x16xf32>
    %273 = vector.shape_cast %153 : vector<1x16xf32> to vector<1x1x16xf32>
    tpu.vector_store %arg5[%c0_153, %c9, %c0_154], %273 {strides = array<i32>} : memref<1x16x16xf32, #tpu.memory_space<vmem>>, vector<1x1x16xf32>,
    %c0_155 = arith.constant 0 : index
    %c10 = arith.constant 10 : index
    %c0_156 = arith.constant 0 : index
    %274 = vector.load %arg5[%c0_155, %c10, %c0_156] : memref<1x16x16xf32, #tpu.memory_space<vmem>>, vector<1x1x16xf32>
    %275 = vector.shape_cast %274 : vector<1x1x16xf32> to vector<1x16xf32>
    %276 = vector.shape_cast %168 : vector<1x16xf32> to vector<1x1x16xf32>
    tpu.vector_store %arg5[%c0_155, %c10, %c0_156], %276 {strides = array<i32>} : memref<1x16x16xf32, #tpu.memory_space<vmem>>, vector<1x1x16xf32>,
    %c0_157 = arith.constant 0 : index
    %c11 = arith.constant 11 : index
    %c0_158 = arith.constant 0 : index
    %277 = vector.load %arg5[%c0_157, %c11, %c0_158] : memref<1x16x16xf32, #tpu.memory_space<vmem>>, vector<1x1x16xf32>
    %278 = vector.shape_cast %277 : vector<1x1x16xf32> to vector<1x16xf32>
    %279 = vector.shape_cast %183 : vector<1x16xf32> to vector<1x1x16xf32>
    tpu.vector_store %arg5[%c0_157, %c11, %c0_158], %279 {strides = array<i32>} : memref<1x16x16xf32, #tpu.memory_space<vmem>>, vector<1x1x16xf32>,
    %c0_159 = arith.constant 0 : index
    %c12_160 = arith.constant 12 : index
    %c0_161 = arith.constant 0 : index
    %280 = vector.load %arg5[%c0_159, %c12_160, %c0_161] : memref<1x16x16xf32, #tpu.memory_space<vmem>>, vector<1x1x16xf32>
    %281 = vector.shape_cast %280 : vector<1x1x16xf32> to vector<1x16xf32>
    %282 = vector.shape_cast %198 : vector<1x16xf32> to vector<1x1x16xf32>
    tpu.vector_store %arg5[%c0_159, %c12_160, %c0_161], %282 {strides = array<i32>} : memref<1x16x16xf32, #tpu.memory_space<vmem>>, vector<1x1x16xf32>,
    %c0_162 = arith.constant 0 : index
    %c13 = arith.constant 13 : index
    %c0_163 = arith.constant 0 : index
    %283 = vector.load %arg5[%c0_162, %c13, %c0_163] : memref<1x16x16xf32, #tpu.memory_space<vmem>>, vector<1x1x16xf32>
    %284 = vector.shape_cast %283 : vector<1x1x16xf32> to vector<1x16xf32>
    %285 = vector.shape_cast %213 : vector<1x16xf32> to vector<1x1x16xf32>
    tpu.vector_store %arg5[%c0_162, %c13, %c0_163], %285 {strides = array<i32>} : memref<1x16x16xf32, #tpu.memory_space<vmem>>, vector<1x1x16xf32>,
    %c0_164 = arith.constant 0 : index
    %c14 = arith.constant 14 : index
    %c0_165 = arith.constant 0 : index
    %286 = vector.load %arg5[%c0_164, %c14, %c0_165] : memref<1x16x16xf32, #tpu.memory_space<vmem>>, vector<1x1x16xf32>
    %287 = vector.shape_cast %286 : vector<1x1x16xf32> to vector<1x16xf32>
    %288 = vector.shape_cast %228 : vector<1x16xf32> to vector<1x1x16xf32>
    tpu.vector_store %arg5[%c0_164, %c14, %c0_165], %288 {strides = array<i32>} : memref<1x16x16xf32, #tpu.memory_space<vmem>>, vector<1x1x16xf32>,
    %c0_166 = arith.constant 0 : index
    %c15 = arith.constant 15 : index
    %c0_167 = arith.constant 0 : index
    %289 = vector.load %arg5[%c0_166, %c15, %c0_167] : memref<1x16x16xf32, #tpu.memory_space<vmem>>, vector<1x1x16xf32>
    %290 = vector.shape_cast %289 : vector<1x1x16xf32> to vector<1x16xf32>
    %291 = vector.shape_cast %243 : vector<1x16xf32> to vector<1x1x16xf32>
    tpu.vector_store %arg5[%c0_166, %c15, %c0_167], %291 {strides = array<i32>} : memref<1x16x16xf32, #tpu.memory_space<vmem>>, vector<1x1x16xf32>,
    %292 = arith.maximumf %18, %33 : vector<1x16xf32>
    %293 = arith.maximumf %292, %78 : vector<1x16xf32>
    %294 = arith.maximumf %293, %93 : vector<1x16xf32>
    %295 = arith.maximumf %48, %63 : vector<1x16xf32>
    %296 = arith.maximumf %295, %108 : vector<1x16xf32>
    %297 = arith.maximumf %296, %123 : vector<1x16xf32>
    %298 = arith.maximumf %138, %153 : vector<1x16xf32>
    %299 = arith.maximumf %298, %198 : vector<1x16xf32>
    %300 = arith.maximumf %299, %213 : vector<1x16xf32>
    %301 = arith.maximumf %168, %183 : vector<1x16xf32>
    %302 = arith.maximumf %301, %228 : vector<1x16xf32>
    %303 = arith.maximumf %302, %243 : vector<1x16xf32>
    %c0_168 = arith.constant 0 : index
    %c0_169 = arith.constant 0 : index
    %c0_170 = arith.constant 0 : index
    %304 = vector.load %arg4[%c0_168, %c0_169, %c0_170] : memref<1x4x16xf32, #tpu.memory_space<vmem>>, vector<1x1x16xf32>
    %305 = vector.shape_cast %304 : vector<1x1x16xf32> to vector<1x16xf32>
    %306 = vector.shape_cast %294 : vector<1x16xf32> to vector<1x1x16xf32>
    tpu.vector_store %arg4[%c0_168, %c0_169, %c0_170], %306 {strides = array<i32>} : memref<1x4x16xf32, #tpu.memory_space<vmem>>, vector<1x1x16xf32>,
    %c0_171 = arith.constant 0 : index
    %c1_172 = arith.constant 1 : index
    %c0_173 = arith.constant 0 : index
    %307 = vector.load %arg4[%c0_171, %c1_172, %c0_173] : memref<1x4x16xf32, #tpu.memory_space<vmem>>, vector<1x1x16xf32>
    %308 = vector.shape_cast %307 : vector<1x1x16xf32> to vector<1x16xf32>
    %309 = vector.shape_cast %297 : vector<1x16xf32> to vector<1x1x16xf32>
    tpu.vector_store %arg4[%c0_171, %c1_172, %c0_173], %309 {strides = array<i32>} : memref<1x4x16xf32, #tpu.memory_space<vmem>>, vector<1x1x16xf32>,
    %c0_174 = arith.constant 0 : index
    %c2_175 = arith.constant 2 : index
    %c0_176 = arith.constant 0 : index
    %310 = vector.load %arg4[%c0_174, %c2_175, %c0_176] : memref<1x4x16xf32, #tpu.memory_space<vmem>>, vector<1x1x16xf32>
    %311 = vector.shape_cast %310 : vector<1x1x16xf32> to vector<1x16xf32>
    %312 = vector.shape_cast %300 : vector<1x16xf32> to vector<1x1x16xf32>
    tpu.vector_store %arg4[%c0_174, %c2_175, %c0_176], %312 {strides = array<i32>} : memref<1x4x16xf32, #tpu.memory_space<vmem>>, vector<1x1x16xf32>,
    %c0_177 = arith.constant 0 : index
    %c3_178 = arith.constant 3 : index
    %c0_179 = arith.constant 0 : index
    %313 = vector.load %arg4[%c0_177, %c3_178, %c0_179] : memref<1x4x16xf32, #tpu.memory_space<vmem>>, vector<1x1x16xf32>
    %314 = vector.shape_cast %313 : vector<1x1x16xf32> to vector<1x16xf32>
    %315 = vector.shape_cast %303 : vector<1x16xf32> to vector<1x1x16xf32>
    tpu.vector_store %arg4[%c0_177, %c3_178, %c0_179], %315 {strides = array<i32>} : memref<1x4x16xf32, #tpu.memory_space<vmem>>, vector<1x1x16xf32>,
    %316 = arith.maximumf %18, %33 : vector<1x16xf32>
    %317 = arith.maximumf %316, %48 : vector<1x16xf32>
    %318 = arith.maximumf %317, %63 : vector<1x16xf32>
    %319 = arith.maximumf %318, %78 : vector<1x16xf32>
    %320 = arith.maximumf %319, %93 : vector<1x16xf32>
    %321 = arith.maximumf %320, %108 : vector<1x16xf32>
    %322 = arith.maximumf %321, %123 : vector<1x16xf32>
    %323 = arith.maximumf %322, %138 : vector<1x16xf32>
    %324 = arith.maximumf %323, %153 : vector<1x16xf32>
    %325 = arith.maximumf %324, %168 : vector<1x16xf32>
    %326 = arith.maximumf %325, %183 : vector<1x16xf32>
    %327 = arith.maximumf %326, %198 : vector<1x16xf32>
    %328 = arith.maximumf %327, %213 : vector<1x16xf32>
    %329 = arith.maximumf %328, %228 : vector<1x16xf32>
    %330 = arith.maximumf %329, %243 : vector<1x16xf32>
    %c0_180 = arith.constant 0 : index
    %c0_181 = arith.constant 0 : index
    %c0_182 = arith.constant 0 : index
    %331 = vector.load %arg3[%c0_180, %c0_181, %c0_182] : memref<1x1x16xf32, #tpu.memory_space<vmem>>, vector<1x1x16xf32>
    %332 = vector.shape_cast %331 : vector<1x1x16xf32> to vector<1x16xf32>
    %333 = vector.shape_cast %330 : vector<1x16xf32> to vector<1x1x16xf32>
    tpu.vector_store %arg3[%c0_180, %c0_181, %c0_182], %333 {strides = array<i32>} : memref<1x1x16xf32, #tpu.memory_space<vmem>>, vector<1x1x16xf32>,
    return
  }
  func.func @transform_0(%arg0: i32, %arg1: i32) -> (i32, i32, i32) {
    %c0_i32 = arith.constant 0 : i32
    %c0_i32_0 = arith.constant 0 : i32
    return %arg0, %arg1, %c0_i32 : i32, i32, i32
  }
  func.func @transform_1(%arg0: i32, %arg1: i32) -> (i32, i32, i32) {
    %c0_i32 = arith.constant 0 : i32
    %c0_i32_0 = arith.constant 0 : i32
    return %arg0, %c0_i32, %arg1 : i32, i32, i32
  }
  func.func @transform_2(%arg0: i32, %arg1: i32) -> (i32, i32, i32) {
    %c0_i32 = arith.constant 0 : i32
    %c0_i32_0 = arith.constant 0 : i32
    return %arg0, %c0_i32, %arg1 : i32, i32, i32
  }
  func.func @transform_3(%arg0: i32, %arg1: i32) -> (i32, i32, i32) {
    %c0_i32 = arith.constant 0 : i32
    %c0_i32_0 = arith.constant 0 : i32
    return %arg0, %c0_i32, %arg1 : i32, i32, i32
  }
}

</mosaic_0001>

<bundles_post_ra>
// kernel: tpu_custom_call.1
= control target key start
LH: loop header
LB: loop body
LE: loop exit
PB: predicated region body
PF: predicated region fallthrough
CT: control target
= control target key end

     0   :  { %9 = vsyncpa [#allocation4], 0  ;;  %s2220_s0 = inlined_call_operand.hbm [shape: f32[2,16,256], index: 0, kind: input, shape index: {}]   ;;  %s2221_s1 = inlined_call_operand.hbm [shape: f32[2,1,16], index: 1, kind: output, shape index: {0}]   ;;  %s2222_s2 = inlined_call_operand.hbm [shape: f32[2,4,16], index: 2, kind: output, shape index: {1}]   ;;  %s2223_s3 = inlined_call_operand.hbm [shape: f32[2,16,16], index: 3, kind: output, shape index: {2}]  }
   0x1   :  { %11 = vsyncpa [#allocation4 + $0x1], 0 }
   0x2   :  { %12 = vsyncpa [#allocation5], 0 }
   0x3   :  { %14 = vsyncpa [#allocation5 + $0x1], 0 }
   0x4   :  { %15 = vsyncpa [#allocation8], 0 }
   0x5   :  { %17 = vsyncpa [#allocation8 + $0x1], 0  ;;  %s1437_s12 = smov 0   ;;  %s1439_s13 = smov 0  }
   0x6   :  { %s1441_s14 = smov 0   ;;  %s1443_s15 = smov 0  }
   0x7   :  { %s1445_s16 = smov 0   ;;  %s1447_s17 = smov 0  }
   0x8 LB: > { %s1468_s18 = sadd.s32 4294967295, %s1407_s17   ;;  %s2261_s19 = sadd.s32 4294967294, %s1407_s17   ;;  %s1407_s17 = sphi %s1447_s17, %s23_s17   ;;  %s1403_s16 = sphi %s1445_s16, %s2364_s16   ;;  %s1399_s15 = sphi %s1443_s15, %s2363_s15   ;;  %s1395_s14 = sphi %s1441_s14, %s2362_s14   ;;  %s1391_s13 = sphi %s1439_s13, %s2361_s13   ;;  %s1387_s12 = sphi %s1437_s12, %s2360_s12  }
   0x9   : > { %s35_s20 = sadd.s32 1, %s1403_s16  ;;  %s44_s21 = sadd.s32 1, %s1395_s14 }
   0xa   : > { %p37_p0 = scmp.ge.s32.totalorder %s35_s20, 2  ;;  %p51_p1 = scmp.ne.s32.totalorder %s1395_s14, %s1391_s13 }
   0xb   : > { %p52_p2 = scmp.eq.s32.totalorder %s1407_s17, 0  ;;  %p57_p3 = scmp.ne.s32.totalorder %s1391_s13, %s1387_s12 }
   0xc   : > { %s2366_s20 = smov (%p37_p0, %s35_s20), 0  ;;  %p58_p5 = scmp.eq.s32.totalorder %s1468_s18, 0 }
   0xd   : > { %p1480_p4 = por %p52_p2, %p51_p1  ;;  %s39_s23 = ssub.s32 %s1403_s16, %s2366_s20 }
   0xe   : > { %p83_p6 = scmp.eq.s32.totalorder %s1468_s18, 1  ;;  %p42_p7 = scmp.eq.s32.totalorder %s39_s23, 0 }
   0xf   : > { %p1488_p8 = por %p58_p5, %p57_p3  ;;  %p89_p10 = scmp.eq.s32.totalorder %s2261_s19, 1 }
  0x10   : > { %p1492_p9 = por %p83_p6, %p51_p1  ;;  %p1180_p13 = scmp.lt.s32.totalorder %s1407_s17, 2 }
  0x11   : > { %s1499_s26 = scalar_select %p42_p7, %s1395_s14, %s44_s21  }
  0x12   : > { %s2265_s25 = scalar_select %p1492_p9, 1, 0 }
  0x13   : > { %p1501_p11 = por %p89_p10, %p57_p3  ;;  %s165_s28 = sand.u32 1, %s1395_s14  }
  0x14   : > { %s1141_s29 = sshll.u32 %s165_s28, 5  ;;  %s1156_s30 = sshll.u32 %s1403_s16, 9 }
  0x15   : > { %s2266_s27 = scalar_select %p1501_p11, 1, 0 }
  0x16   : > { %s1512_s6 = scalar_lea.hbm %s2220_s0, %s1156_s30  ;;  %s169_s7 = scalar_lea.vmem [#allocation3], %s1141_s29 }
  0x17   : > { %s179_s8 = sshll.u32 %s169_s7, 4  ;;  %p1518_p0 = pnand %p1180_p13, %p1480_p4  ;;  %s1514_s8 = int_to_ptr.vmem [resolvable:$true] %s179_s8 }
  0x18   : > { %s1523_s10 = scalar_lea.sflag [#allocation4], %s165_s28  ;;  %s1235_s11 = scalar_lea.hbm %s1512_s6, 512 }
  0x19   : > { %p1236_p2 = scmp.ne.s32.totalorder %s1512_s6, %s1235_s11  ;;  %p1237_p3 = pneg %p1518_p0 }
  0x1a   : > { %s1240_s22 = scalar_lea.hbm %s2220_s0, 1024  ;;  %p1241_p4 = scmp.lt.u32.totalorder %s1512_s6, %s2220_s0 }
  0x1b   : > { %p1238_p5 = pnand %p1237_p3, %p1236_p2  ;;  %p1242_p7 = scmp.lt.u32.totalorder %s1240_s22, %s1235_s11 }
  0x1c   : > { %p1244_p13 = scmp.lt.u32.totalorder %s1235_s11, %s1512_s6 }
  0x1d   : > { %p1239_p6 = pneg %p1238_p5  ;;  %p1243_p10 = por %p1242_p7, %p1241_p4 }
  0x1f   : > { %p1245_p12 = por %p1244_p13, %p1243_p10 }
  0x21   : > { %p1246_p1 = pnand %p1245_p12, %p1239_p6 }
  0x23   : > { %1249 = shalt.err (!%p1246_p1)
}
  0x24   : > { %s1250_s28 = scalar_lea.vmem %s1514_s8, 512  ;;  %s1409_s4 = smov [#allocation3]  }
  0x25   : > { %p1251_p2 = scmp.ne.s32.totalorder %s1514_s8, %s1250_s28  ;;  %s1255_s5 = sshll.u32 %s1409_s4, 4  ;;  %s1256_s5 = int_to_ptr.vmem [resolvable:$false] %s1255_s5 }
  0x26   : > { %s1257_s7 = scalar_lea.vmem %s1256_s5, 1024  ;;  %p1258_p9 = scmp.lt.s32.totalorder %s1514_s8, %s1256_s5 }
  0x27   : > { %p1253_p5 = pnand %p1251_p2, %p1237_p3  ;;  %p1259_p4 = scmp.lt.s32.totalorder %s1257_s7, %s1250_s28 }
  0x29   : > { %p1254_p11 = pneg %p1253_p5  ;;  %p1260_p7 = por %p1259_p4, %p1258_p9 }
  0x2b   : > { %p1261_p10 = pnand %p1260_p7, %p1254_p11 }
  0x2d   : > { %1264 = shalt.err (!%p1261_p10)
}
  0x2e   : > { %s1410_s11 = smov 256   ;;  %s1411_s21 = smov 16  }
  0x2f   : > { %1169 = dma.hbm_to_vmem [thread:$0]  (!%p1518_p0), %s1512_s6, 512, %s1514_s8, %s1523_s10, %s1410_s11, %s1410_s11, %s1411_s21  }
  0x30   : > { %p187_p12 = scmp.lt.s32.totalorder %s1407_s17, 3  ;;  %p2268_p1 = scmp.ge.s32.totalorder %s1407_s17, 1 }
  0x32   : > { %p188_p3 = pnand %p2268_p1, %p187_p12 }
  0x34   : > { %191 = sbr.rel (%p188_p3) target bundleno = 404 (0x194), region = 24 }
  0x3b   : > { %s1555_s23 = sand.u32 1, %s1391_s13  }
  0x3c   : > { %s1145_s22 = sshll.u32 %s1555_s23, 5  ;;  %s194_s29 = scalar_lea.sflag [#allocation4], %s1555_s23 }
  0x3d   : > { %s197_s30 = scalar_lea.vmem [#allocation3], %s1145_s22 }
  0x3e   : > { %1374 = dma.done.wait (%p1488_p8), %s194_s29, 512  }
  0x3f   : > { %1376 = vsyncadd (%p1488_p8), %s194_s29, 4294966784  ;;  %v231_v0 = vld [vmem:[%s197_s30 + $0x8] sm:$0xff]  ;;  %v230_v1 = vld [vmem:[%s197_s30] sm:$0xff]  ;;  %vm298_vm0 = vcmask 130048   ;;  %vm332_vm1 = vcmask 125952   ;;  %vm892_vm2 = vcmask 122880  }
  0x40   : > { %266 = vxpose.xlu1.b32.start [1/2] (short) %v231_v0, 128  ;;  %234 = vxpose.xlu0.b32.start [1/2] (short) %v230_v1, 128  ;;  %v233_v2 = vld [vmem:[%s197_s30 + $0x18] sm:$0xff]  ;;  %v232_v3 = vld [vmem:[%s197_s30 + $0x10] sm:$0xff]  ;;  %s1147_s24 = sshll.u32 %s1555_s23, 4  ;;  %s1146_s8 = sshll.u32 %s1555_s23, 2 }
  0x41   : > { %s1875_s6 = scalar_lea.vmem [#allocation9], %s1147_s24  ;;  %s944_s9 = sand.u32 1, %s1468_s18  }
  0x42   : > { %s1151_s10 = sshll.u32 %s1399_s15, 6  ;;  %s221_s28 = scalar_lea.vmem [#allocation7], %s1146_s8 }
  0x43   : > { %s978_s4 = sshll.u32 %s221_s28, 4  ;;  %s2093_s11 = scalar_lea.hbm %s2222_s2, %s1151_s10  ;;  %s2099_s4 = int_to_ptr.vmem [resolvable:$true] %s978_s4 }
  0x44   : > { %267 = vxpose.xlu1.b32.end [2/2] (short) %v233_v2, 128  ;;  %235 = vxpose.xlu0.b32.end [2/2] (short) %v232_v3, 128  ;;  %s1157_s21 = sshll.u32 %s1399_s15, 8  ;;  %s992_s22 = sshll.u32 %s1875_s6, 4  ;;  %s2112_s22 = int_to_ptr.vmem [resolvable:$true] %s992_s22 }
  0x45   : > { %s1150_s29 = sshll.u32 %s1399_s15, 4  ;;  %s2262_s30 = scalar_lea.vmem [#allocation6], %s1555_s23 }
  0x46   : > { %s964_s24 = sshll.u32 %s2262_s30, 4  ;;  %s2110_s5 = scalar_lea.hbm %s2223_s3, %s1157_s21  ;;  %s2120_s24 = int_to_ptr.vmem [resolvable:$true] %s964_s24 }
  0x47   : > { %s2118_s19 = scalar_lea.hbm %s2221_s1, %s1150_s29  ;;  %s1265_s30 = scalar_lea.vmem %s2099_s4, 64 }
  0x48   : > { %p1266_p8 = scmp.ne.s32.totalorder %s2099_s4, %s1265_s30  ;;  %p2355_p9 = scmp.ne.s32.totalorder %s2265_s25, 0 }
  0x49   : > { %s1412_s21 = smov [#allocation7]  }
  0x4a   : > { %p1267_p11 = pnand %p1266_p8, %p2355_p9  ;;  %s1269_s8 = sshll.u32 %s1412_s21, 4  ;;  %s1270_s8 = int_to_ptr.vmem [resolvable:$false] %s1269_s8 }
  0x4b   : > { %s1271_s10 = scalar_lea.vmem %s1270_s8, 128  ;;  %p1272_p6 = scmp.lt.s32.totalorder %s2099_s4, %s1270_s8 }
  0x4c   : > { %p1268_p0 = pneg %p1267_p11  ;;  %p1273_p13 = scmp.lt.s32.totalorder %s1271_s10, %s1265_s30 }
  0x4e   : > { %p1274_p2 = por %p1273_p13, %p1272_p6 }
  0x50   : > { %p1275_p5 = pnand %p1274_p2, %p1268_p0 }
  0xc0   : > { %v282_v4 = vpop.trf.xlu1  ;;  %v250_v5 = vpop.trf.xlu0 }
  0xc1   : > { %315 = vst.msk [vmem:[#allocation2 + $0x80] sm:$0xff] %vm298_vm0, %v282_v4  ;;  %299 = vst.msk [vmem:[#allocation2] sm:$0xff] %vm298_vm0, %v250_v5 }
  0xc4   : > { %v283_v6 = vpop.trf.xlu1  ;;  %v251_v7 = vpop.trf.xlu0 }
  0xc5   : > { %316 = vst.msk [vmem:[#allocation2 + $0x88] sm:$0xff] %vm298_vm0, %v283_v6  ;;  %300 = vst.msk [vmem:[#allocation2 + $0x8] sm:$0xff] %vm298_vm0, %v251_v7 }
  0xc8   : > { %v612_v8 = vld [vmem:[#allocation2 + $0x80] sm:$0xf]  ;;  %v647_v9 = vld [vmem:[#allocation2 + $0x84] sm:$0xf]  ;;  %v284_v11 = vpop.trf.xlu1  ;;  %v252_v12 = vpop.trf.xlu0 }
  0xc9   : > { %v331_v10 = vld [vmem:[#allocation2] sm:$0xf]  ;;  %v613_v13 = vsel %vm332_vm1, %v612_v8, -inf  ;;  %v648_v14 = vsel %vm332_vm1, %v647_v9, -inf  ;;  %v367_v16 = vld [vmem:[#allocation2 + $0x4] sm:$0xf] }
  0xca   : > { %v333_v15 = vsel %vm332_vm1, %v331_v10, -inf  ;;  %317 = vst.msk [vmem:[#allocation2 + $0x90] sm:$0xff] %vm298_vm0, %v284_v11  ;;  %301 = vst.msk [vmem:[#allocation2 + $0x10] sm:$0xff] %vm298_vm0, %v252_v12  ;;  %v614_v17 = vrot.slane %v613_v13, 4  ;;  %v649_v18 = vrot.slane %v648_v14, 4  ;;  %v368_v20 = vsel %vm332_vm1, %v367_v16, -inf }
  0xcb   : > { %v334_v19 = vrot.slane %v333_v15, 4  ;;  %v369_v21 = vrot.slane %v368_v20, 4 }
  0xcc   : > { %v615_v22 = vmax.f32 %v613_v13, %v614_v17  ;;  %v650_v23 = vmax.f32 %v648_v14, %v649_v18  ;;  %v682_v25 = vld [vmem:[#allocation2 + $0x88] sm:$0xf]  ;;  %v717_v26 = vld [vmem:[#allocation2 + $0x8c] sm:$0xf]  ;;  %v285_v28 = vpop.trf.xlu1  ;;  %v253_v29 = vpop.trf.xlu0 }
  0xcd   : > { %v1573_v24 = vmax.f32 %v333_v15, %v334_v19  ;;  %v402_v27 = vld [vmem:[#allocation2 + $0x8] sm:$0xf]  ;;  %v1575_v30 = vmax.f32 %v368_v20, %v369_v21  ;;  %v683_v31 = vsel %vm332_vm1, %v682_v25, -inf  ;;  %v718_v32 = vsel %vm332_vm1, %v717_v26, -inf  ;;  %v437_v34 = vld [vmem:[#allocation2 + $0xc] sm:$0xf] }
  0xce   : > { %v403_v33 = vsel %vm332_vm1, %v402_v27, -inf  ;;  %318 = vst.msk [vmem:[#allocation2 + $0x98] sm:$0xff] %vm298_vm0, %v285_v28  ;;  %302 = vst.msk [vmem:[#allocation2 + $0x18] sm:$0xff] %vm298_vm0, %v253_v29  ;;  %v616_v35 = vrot.slane %v615_v22, 2  ;;  %v651_v36 = vrot.slane %v650_v23, 2  ;;  %v684_v38 = vrot.slane %v683_v31, 4 }
  0xcf   : > { %v719_v40 = vrot.slane %v718_v32, 4  ;;  %v404_v41 = vrot.slane %v403_v33, 4  ;;  %v438_v42 = vsel %vm332_vm1, %v437_v34, -inf }
  0xd0   : > { %v1585_v43 = vmax.f32 %v615_v22, %v616_v35  ;;  %v1587_v44 = vmax.f32 %v650_v23, %v651_v36  ;;  %v685_v45 = vmax.f32 %v683_v31, %v684_v38  ;;  %v439_v46 = vrot.slane %v438_v42, 4  ;;  %v286_v49 = vpop.trf.xlu1  ;;  %v254_v50 = vpop.trf.xlu0 }
  0xd1   : > { %v620_v47 = vld [vmem:[#allocation2 + $0x90] sm:$0xf]  ;;  %v655_v48 = vld [vmem:[#allocation2 + $0x94] sm:$0xf]  ;;  %v720_v51 = vmax.f32 %v718_v32, %v719_v40  ;;  %v405_v52 = vmax.f32 %v403_v33, %v404_v41  ;;  %319 = vst.msk [vmem:[#allocation2 + $0xa0] sm:$0xff] %vm298_vm0, %v286_v49  ;;  %303 = vst.msk [vmem:[#allocation2 + $0x20] sm:$0xff] %vm298_vm0, %v254_v50 }
  0xd2   : > { %v621_v53 = vsel %vm332_vm1, %v620_v47, -inf  ;;  %v656_v54 = vsel %vm332_vm1, %v655_v48, -inf  ;;  %v340_v55 = vld [vmem:[#allocation2 + $0x10] sm:$0xf]  ;;  %v375_v56 = vld [vmem:[#allocation2 + $0x14] sm:$0xf]  ;;  %v440_v60 = vmax.f32 %v438_v42, %v439_v46 }
  0xd3   : > { %v686_v59 = vrot.slane %v685_v45, 2  ;;  %v721_v61 = vrot.slane %v720_v51, 2  ;;  %v406_v62 = vrot.slane %v405_v52, 2  ;;  %v622_v63 = vrot.slane %v621_v53, 4 }
  0xd4   : > { %v657_v0 = vrot.slane %v656_v54, 4  ;;  %v441_v2 = vrot.slane %v440_v60, 2  ;;  %v341_v3 = vsel %vm332_vm1, %v340_v55, -inf  ;;  %v376_v4 = vsel %vm332_vm1, %v375_v56, -inf  ;;  %v287_v5 = vpop.trf.xlu1  ;;  %v255_v6 = vpop.trf.xlu0 }
  0xd5   : > { %v1595_v1 = vmax.f32 %v685_v45, %v686_v59  ;;  %v1599_v7 = vmax.f32 %v720_v51, %v721_v61  ;;  %v1601_v8 = vmax.f32 %v405_v52, %v406_v62  ;;  %v623_v9 = vmax.f32 %v621_v53, %v622_v63  ;;  %v690_v11 = vld [vmem:[#allocation2 + $0x98] sm:$0xf]  ;;  %320 = vst.msk [vmem:[#allocation2 + $0xa8] sm:$0xff] %vm298_vm0, %v287_v5  ;;  %v725_v16 = vld [vmem:[#allocation2 + $0x9c] sm:$0xf] }
  0xd6   : > { %v658_v10 = vmax.f32 %v656_v54, %v657_v0  ;;  %304 = vst.msk [vmem:[#allocation2 + $0x28] sm:$0xff] %vm298_vm0, %v255_v6  ;;  %v1606_v13 = vmax.f32 %v440_v60, %v441_v2  ;;  %v342_v14 = vrot.slane %v341_v3, 4  ;;  %v377_v15 = vrot.slane %v376_v4, 4  ;;  %v410_v21 = vld [vmem:[#allocation2 + $0x18] sm:$0xf] }
  0xd7   : > { %2269 = vst [vmem:[#allocation13_spill] sm:$0xff] %v1599_v7  ;;  %v624_v19 = vrot.slane %v623_v9, 2  ;;  %v691_v26 = vsel %vm332_vm1, %v690_v11, -inf  ;;  %v445_v27 = vld [vmem:[#allocation2 + $0x1c] sm:$0xf]  ;;  %v726_v34 = vsel %vm332_vm1, %v725_v16, -inf }
  0xd8   : > { %v659_v20 = vrot.slane %v658_v10, 2  ;;  %v1611_v23 = vmax.f32 %v341_v3, %v342_v14  ;;  %v1613_v25 = vmax.f32 %v376_v4, %v377_v15  ;;  %v288_v28 = vpop.trf.xlu1  ;;  %v256_v29 = vpop.trf.xlu0  ;;  %v692_v33 = vrot.slane %v691_v26, 4  ;;  %v629_v35 = vld [vmem:[#allocation2 + $0xa0] sm:$0xf]  ;;  %v664_v36 = vld [vmem:[#allocation2 + $0xa4] sm:$0xf] }
  0xd9   : > { %v1616_v31 = vmax.f32 %v623_v9, %v624_v19  ;;  %321 = vst.msk [vmem:[#allocation2 + $0xb0] sm:$0xff] %vm298_vm0, %v288_v28  ;;  %305 = vst.msk [vmem:[#allocation2 + $0x30] sm:$0xff] %vm298_vm0, %v256_v29  ;;  %v727_v41 = vrot.slane %v726_v34, 4  ;;  %v411_v42 = vsel %vm332_vm1, %v410_v21, -inf  ;;  %v349_v45 = vld [vmem:[#allocation2 + $0x20] sm:$0xf] }
  0xda   : > { %v1618_v32 = vmax.f32 %v658_v10, %v659_v20  ;;  %v693_v48 = vmax.f32 %v691_v26, %v692_v33  ;;  %v412_v49 = vrot.slane %v411_v42, 4  ;;  %v384_v50 = vld [vmem:[#allocation2 + $0x24] sm:$0xf]  ;;  %v446_v52 = vsel %vm332_vm1, %v445_v27, -inf }
  0xdb   : > { %v728_v51 = vmax.f32 %v726_v34, %v727_v41  ;;  %v630_v53 = vsel %vm332_vm1, %v629_v35, -inf  ;;  %v665_v54 = vsel %vm332_vm1, %v664_v36, -inf  ;;  %v447_v61 = vrot.slane %v446_v52, 4 }
  0xdc   : > { %v289_v55 = vpop.trf.xlu1  ;;  %v257_v56 = vpop.trf.xlu0  ;;  %v694_v59 = vrot.slane %v693_v48, 2  ;;  %v413_v60 = vmax.f32 %v411_v42, %v412_v49  ;;  %v631_v62 = vrot.slane %v630_v53, 4  ;;  %v666_v0 = vrot.slane %v665_v54, 4  ;;  %v699_v16 = vld [vmem:[#allocation2 + $0xa8] sm:$0xf] }
  0xdd   : > { %322 = vst.msk [vmem:[#allocation2 + $0xb8] sm:$0xff] %vm298_vm0, %v289_v55  ;;  %306 = vst.msk [vmem:[#allocation2 + $0x38] sm:$0xff] %vm298_vm0, %v257_v56  ;;  %v729_v63 = vrot.slane %v728_v51, 2  ;;  %v350_v2 = vsel %vm332_vm1, %v349_v45, -inf  ;;  %v385_v3 = vsel %vm332_vm1, %v384_v50, -inf  ;;  %v448_v6 = vmax.f32 %v446_v52, %v447_v61 }
  0xde   : > { %v1635_v4 = vmax.f32 %v693_v48, %v694_v59  ;;  %v414_v5 = vrot.slane %v413_v60, 2  ;;  %v632_v9 = vmax.f32 %v630_v53, %v631_v62  ;;  %v667_v11 = vmax.f32 %v665_v54, %v666_v0  ;;  %v734_v19 = vld [vmem:[#allocation2 + $0xac] sm:$0xf]  ;;  %v419_v33 = vld [vmem:[#allocation2 + $0x28] sm:$0xf] }
  0xdf   : > { %v1637_v10 = vmax.f32 %v728_v51, %v729_v63  ;;  %v351_v14 = vrot.slane %v350_v2, 4  ;;  %v386_v15 = vrot.slane %v385_v3, 4  ;;  %v449_v28 = vrot.slane %v448_v6, 2  ;;  %v454_v42 = vld [vmem:[#allocation2 + $0x2c] sm:$0xf] }
  0xe0   : > { %2270 = vst [vmem:[#allocation14_spill] sm:$0xff] %v1635_v4  ;;  %v290_v20 = vpop.trf.xlu1  ;;  %v258_v21 = vpop.trf.xlu0  ;;  %v1640_v27 = vmax.f32 %v413_v60, %v414_v5  ;;  %v633_v29 = vrot.slane %v632_v9, 2  ;;  %v668_v35 = vrot.slane %v667_v11, 2  ;;  %v700_v50 = vsel %vm332_vm1, %v699_v16, -inf  ;;  %v638_v51 = vld [vmem:[#allocation2 + $0xb0] sm:$0xf] }
  0xe1   : > { %2271 = vst [vmem:[#allocation15_spill] sm:$0xff] %v1637_v10  ;;  %323 = vst.msk [vmem:[#allocation2 + $0xc0] sm:$0xff] %vm298_vm0, %v290_v20  ;;  %v1645_v36 = vmax.f32 %v350_v2, %v351_v14  ;;  %v1647_v41 = vmax.f32 %v385_v3, %v386_v15  ;;  %v1650_v48 = vmax.f32 %v448_v6, %v449_v28  ;;  %v673_v52 = vld [vmem:[#allocation2 + $0xb4] sm:$0xf]  ;;  %v701_v54 = vrot.slane %v700_v50, 4 }
  0xe2   : > { %307 = vst.msk [vmem:[#allocation2 + $0x40] sm:$0xff] %vm298_vm0, %v258_v21  ;;  %v1652_v49 = vmax.f32 %v632_v9, %v633_v29  ;;  %v1655_v53 = vmax.f32 %v667_v11, %v668_v35  ;;  %v735_v55 = vsel %vm332_vm1, %v734_v19, -inf  ;;  %v420_v56 = vsel %vm332_vm1, %v419_v33, -inf  ;;  %v358_v59 = vld [vmem:[#allocation2 + $0x30] sm:$0xf] }
  0xe3   : > { %v736_v63 = vrot.slane %v735_v55, 4  ;;  %v421_v0 = vrot.slane %v420_v56, 4  ;;  %v455_v2 = vsel %vm332_vm1, %v454_v42, -inf  ;;  %v393_v3 = vld [vmem:[#allocation2 + $0x34] sm:$0xf]  ;;  %v702_v5 = vmax.f32 %v700_v50, %v701_v54 }
  0xe4   : > { %v291_v60 = vpop.trf.xlu1  ;;  %v259_v61 = vpop.trf.xlu0  ;;  %v456_v6 = vrot.slane %v455_v2, 4  ;;  %v639_v9 = vsel %vm332_vm1, %v638_v51, -inf  ;;  %v674_v11 = vsel %vm332_vm1, %v673_v52, -inf  ;;  %v708_v20 = vld [vmem:[#allocation2 + $0xb8] sm:$0xf]  ;;  %v1666_v29 = vsel %vm332_vm1, %v358_v59, -inf }
  0xe5   : > { %324 = vst.msk [vmem:[#allocation2 + $0xc8] sm:$0xff] %vm298_vm0, %v291_v60  ;;  %308 = vst.msk [vmem:[#allocation2 + $0x48] sm:$0xff] %vm298_vm0, %v259_v61  ;;  %v737_v14 = vmax.f32 %v735_v55, %v736_v63  ;;  %v422_v15 = vmax.f32 %v420_v56, %v421_v0  ;;  %v640_v16 = vrot.slane %v639_v9, 4  ;;  %v675_v19 = vrot.slane %v674_v11, 4  ;;  %v743_v35 = vld [vmem:[#allocation2 + $0xbc] sm:$0xf] }
  0xe6   : > { %v703_v21 = vrot.slane %v702_v5, 2  ;;  %v457_v28 = vmax.f32 %v455_v2, %v456_v6  ;;  %v1669_v33 = vsel %vm332_vm1, %v393_v3, -inf  ;;  %v428_v55 = vld [vmem:[#allocation2 + $0x38] sm:$0xf]  ;;  %v463_v56 = vld [vmem:[#allocation2 + $0x3c] sm:$0xf] }
  0xe7   : > { %v738_v54 = vrot.slane %v737_v14, 2  ;;  %v423_v51 = vrot.slane %v422_v15, 2  ;;  %v1671_v60 = vmax.f32 %v639_v9, %v640_v16  ;;  %v1673_v52 = vmax.f32 %v674_v11, %v675_v19 }
  0xe8   : > { %v292_v42 = vpop.trf.xlu1  ;;  %v260_v50 = vpop.trf.xlu0  ;;  %v1677_v59 = vmax.f32 %v702_v5, %v703_v21  ;;  %v458_v61 = vrot.slane %v457_v28, 2  ;;  %v752_v2 = vld [vmem:[#allocation2 + $0xc0] sm:$0xf]  ;;  %v787_v16 = vld [vmem:[#allocation2 + $0xc4] sm:$0xf]  ;;  %v709_v5 = vsel %vm332_vm1, %v708_v20, -inf }
  0xe9   : > { %325 = vst.msk [vmem:[#allocation2 + $0xd0] sm:$0xff] %vm298_vm0, %v292_v42  ;;  %309 = vst.msk [vmem:[#allocation2 + $0x50] sm:$0xff] %vm298_vm0, %v260_v50  ;;  %v1681_v3 = vmax.f32 %v737_v14, %v738_v54  ;;  %v1683_v6 = vmax.f32 %v422_v15, %v423_v51  ;;  %v472_v19 = vld [vmem:[#allocation2 + $0x40] sm:$0xf]  ;;  %v744_v21 = vsel %vm332_vm1, %v743_v35, -inf  ;;  %v429_v50 = vsel %vm332_vm1, %v428_v55, -inf }
  0xea   : > { %2272 = vst [vmem:[#allocation16_spill] sm:$0xff] %v1677_v59  ;;  %v1687_v42 = vmax.f32 %v457_v28, %v458_v61  ;;  %v710_v14 = vrot.slane %v709_v5, 4  ;;  %v745_v54 = vrot.slane %v744_v21, 4  ;;  %v430_v15 = vrot.slane %v429_v50, 4  ;;  %v507_v26 = vld [vmem:[#allocation2 + $0x44] sm:$0xf] }
  0xeb   : > { %2273 = vst [vmem:[#allocation17_spill] sm:$0xff] %v1681_v3  ;;  %v464_v51 = vsel %vm332_vm1, %v463_v56, -inf  ;;  %v753_v61 = vsel %vm332_vm1, %v752_v2, -inf  ;;  %v788_v20 = vsel %vm332_vm1, %v787_v16, -inf  ;;  %v473_v35 = vsel %vm332_vm1, %v472_v19, -inf }
  0xec   : > { %v293_v34 = vpop.trf.xlu1  ;;  %v261_v17 = vpop.trf.xlu0  ;;  %v465_v28 = vrot.slane %v464_v51, 4  ;;  %v1698_v55 = vmax.f32 %v709_v5, %v710_v14  ;;  %v1700_v12 = vmax.f32 %v744_v21, %v745_v54  ;;  %v1702_v11 = vmax.f32 %v429_v50, %v430_v15  ;;  %v822_v56 = vld [vmem:[#allocation2 + $0xc8] sm:$0xf]  ;;  %v857_v58 = vld [vmem:[#allocation2 + $0xcc] sm:$0xf] }
  0xed   : > { %326 = vst.msk [vmem:[#allocation2 + $0xd8] sm:$0xff] %vm298_vm0, %v293_v34  ;;  %310 = vst.msk [vmem:[#allocation2 + $0x58] sm:$0xff] %vm298_vm0, %v261_v17  ;;  %v754_v47 = vrot.slane %v753_v61, 4  ;;  %v789_v34 = vrot.slane %v788_v20, 4  ;;  %v474_v17 = vrot.slane %v473_v35, 4  ;;  %v508_v46 = vsel %vm332_vm1, %v507_v26, -inf }
  0xee   : > { %2274 = vst [vmem:[#allocation18_spill] sm:$0xff] %v1698_v55  ;;  %2275 = vst [vmem:[#allocation19_spill] sm:$0xff] %v1700_v12  ;;  %v1704_v9 = vmax.f32 %v464_v51, %v465_v28  ;;  %v542_v2 = vld [vmem:[#allocation2 + $0x48] sm:$0xf]  ;;  %v509_v26 = vrot.slane %v508_v46, 4  ;;  %v823_v62 = vsel %vm332_vm1, %v822_v56, -inf }
  0xef   : > { %v755_v50 = vmax.f32 %v753_v61, %v754_v47  ;;  %v1713_v54 = vmax.f32 %v788_v20, %v789_v34  ;;  %v475_v15 = vmax.f32 %v473_v35, %v474_v17  ;;  %v577_v51 = vld [vmem:[#allocation2 + $0x4c] sm:$0xf]  ;;  %v858_v19 = vsel %vm332_vm1, %v857_v58, -inf }
  0xf0   : > { %v294_v57 = vpop.trf.xlu1  ;;  %v262_v16 = vpop.trf.xlu0  ;;  %v543_v5 = vsel %vm332_vm1, %v542_v2, -inf  ;;  %v760_v22 = vld [vmem:[#allocation2 + $0xd0] sm:$0xf]  ;;  %v1719_v61 = vmax.f32 %v508_v46, %v509_v26  ;;  %v795_v14 = vld [vmem:[#allocation2 + $0xd4] sm:$0xf]  ;;  %v859_v17 = vrot.slane %v858_v19, 4 }
  0xf1   : > { %327 = vst.msk [vmem:[#allocation2 + $0xe0] sm:$0xff] %vm298_vm0, %v294_v57  ;;  %311 = vst.msk [vmem:[#allocation2 + $0x60] sm:$0xff] %vm298_vm0, %v262_v16  ;;  %v756_v28 = vrot.slane %v755_v50, 2  ;;  %v476_v57 = vrot.slane %v475_v15, 2  ;;  %v824_v16 = vrot.slane %v823_v62, 4  ;;  %v544_v21 = vrot.slane %v543_v5, 4 }
  0xf2   : > { %2276 = vst [vmem:[#allocation20_spill] sm:$0xff] %v1713_v54  ;;  %v578_v56 = vsel %vm332_vm1, %v577_v51, -inf  ;;  %v480_v47 = vld [vmem:[#allocation2 + $0x50] sm:$0xf]  ;;  %v515_v45 = vld [vmem:[#allocation2 + $0x54] sm:$0xf]  ;;  %v1729_v18 = vmax.f32 %v858_v19, %v859_v17 }
  0xf3   : > { %v1721_v35 = vmax.f32 %v755_v50, %v756_v28  ;;  %v1726_v58 = vmax.f32 %v475_v15, %v476_v57  ;;  %v825_v46 = vmax.f32 %v823_v62, %v824_v16  ;;  %v579_v26 = vrot.slane %v578_v56, 4 }
  0xf4   : > { %v295_v20 = vpop.trf.xlu1  ;;  %v263_v34 = vpop.trf.xlu0  ;;  %2278 = vst [vmem:[#allocation22_spill] sm:$0xff] %v1729_v18  ;;  %v545_v50 = vmax.f32 %v543_v5, %v544_v21  ;;  %v761_v28 = vsel %vm332_vm1, %v760_v22, -inf  ;;  %v796_v0 = vsel %vm332_vm1, %v795_v14, -inf  ;;  %v830_v15 = vld [vmem:[#allocation2 + $0xd8] sm:$0xf]  ;;  %v481_v2 = vsel %vm332_vm1, %v480_v47, -inf }
  0xf5   : > { %2277 = vst [vmem:[#allocation21_spill] sm:$0xff] %v1721_v35  ;;  %328 = vst.msk [vmem:[#allocation2 + $0xe8] sm:$0xff] %vm298_vm0, %v295_v20  ;;  %v826_v51 = vrot.slane %v825_v46, 2  ;;  %v1733_v40 = vmax.f32 %v578_v56, %v579_v26  ;;  %v762_v20 = vrot.slane %v761_v28, 4  ;;  %v516_v19 = vsel %vm332_vm1, %v515_v45, -inf }
  0xf6   : > { %312 = vst.msk [vmem:[#allocation2 + $0x68] sm:$0xff] %vm298_vm0, %v263_v34  ;;  %v797_v34 = vrot.slane %v796_v0, 4  ;;  %v546_v16 = vrot.slane %v545_v50, 2  ;;  %v865_v5 = vld [vmem:[#allocation2 + $0xdc] sm:$0xf]  ;;  %v482_v62 = vrot.slane %v481_v2, 4 }
  0xf7   : > { %v1740_v22 = vmax.f32 %v825_v46, %v826_v51  ;;  %v763_v14 = vmax.f32 %v761_v28, %v762_v20  ;;  %v550_v56 = vld [vmem:[#allocation2 + $0x58] sm:$0xf]  ;;  %v517_v63 = vrot.slane %v516_v19, 4  ;;  %v831_v47 = vsel %vm332_vm1, %v830_v15, -inf  ;;  %v585_v45 = vld [vmem:[#allocation2 + $0x5c] sm:$0xf] }
  0xf8   : > { %v296_v57 = vpop.trf.xlu1  ;;  %v264_v39 = vpop.trf.xlu0  ;;  %v1743_v17 = vmax.f32 %v796_v0, %v797_v34  ;;  %v1745_v26 = vmax.f32 %v545_v50, %v546_v16  ;;  %v832_v37 = vrot.slane %v831_v47, 4  ;;  %v483_v21 = vmax.f32 %v481_v2, %v482_v62  ;;  %v769_v20 = vld [vmem:[#allocation2 + $0xe0] sm:$0xf]  ;;  %v804_v34 = vld [vmem:[#allocation2 + $0xe4] sm:$0xf] }
  0xf9   : > { %329 = vst.msk [vmem:[#allocation2 + $0xf0] sm:$0xff] %vm298_vm0, %v296_v57  ;;  %313 = vst.msk [vmem:[#allocation2 + $0x70] sm:$0xff] %vm298_vm0, %v264_v39  ;;  %v764_v38 = vrot.slane %v763_v14, 2  ;;  %v866_v39 = vsel %vm332_vm1, %v865_v5, -inf  ;;  %v1750_v28 = vmax.f32 %v516_v19, %v517_v63  ;;  %v551_v50 = vsel %vm332_vm1, %v550_v56, -inf }
  0xfa   : > { %2279 = vst [vmem:[#allocation23_spill] sm:$0xff] %v1740_v22  ;;  %2280 = vst [vmem:[#allocation24_spill] sm:$0xff] %v1743_v17  ;;  %v867_v0 = vrot.slane %v866_v39, 4  ;;  %v833_v16 = vmax.f32 %v831_v47, %v832_v37  ;;  %v552_v57 = vrot.slane %v551_v50, 4  ;;  %v586_v5 = vsel %vm332_vm1, %v585_v45, -inf }
  0xfb   : > { %v1755_v15 = vmax.f32 %v763_v14, %v764_v38  ;;  %v484_v18 = vrot.slane %v483_v21, 2  ;;  %v587_v62 = vrot.slane %v586_v5, 4  ;;  %v489_v19 = vld [vmem:[#allocation2 + $0x60] sm:$0xf]  ;;  %v770_v17 = vsel %vm332_vm1, %v769_v20, -inf }
  0xfc   : > { %v297_v46 = vpop.trf.xlu1  ;;  %v265_v51 = vpop.trf.xlu0  ;;  %v1759_v63 = vmax.f32 %v866_v39, %v867_v0  ;;  %v834_v56 = vrot.slane %v833_v16, 2  ;;  %v553_v22 = vmax.f32 %v551_v50, %v552_v57  ;;  %v771_v47 = vrot.slane %v770_v17, 4  ;;  %v839_v45 = vld [vmem:[#allocation2 + $0xe8] sm:$0xf]  ;;  %v874_v2 = vld [vmem:[#allocation2 + $0xec] sm:$0xf] }
  0xfd   : > { %330 = vst.msk [vmem:[#allocation2 + $0xf8] sm:$0xff] %vm298_vm0, %v297_v46  ;;  %314 = vst.msk [vmem:[#allocation2 + $0x78] sm:$0xff] %vm298_vm0, %v265_v51  ;;  %v805_v46 = vsel %vm332_vm1, %v804_v34, -inf  ;;  %v524_v51 = vld [vmem:[#allocation2 + $0x64] sm:$0xf]  ;;  %v1763_v38 = vmax.f32 %v483_v21, %v484_v18  ;;  %v1766_v14 = vmax.f32 %v586_v5, %v587_v62  ;;  %v490_v57 = vsel %vm332_vm1, %v489_v19, -inf }
  0xfe   : > { %2281 = vst [vmem:[#allocation25_spill] sm:$0xff] %v1755_v15  ;;  %2282 = vst [vmem:[#allocation26_spill] sm:$0xff] %v1759_v63  ;;  %v1768_v39 = vmax.f32 %v833_v16, %v834_v56  ;;  %v554_v0 = vrot.slane %v553_v22, 2  ;;  %v806_v54 = vrot.slane %v805_v46, 4  ;;  %v559_v50 = vld [vmem:[#allocation2 + $0x68] sm:$0xf]  ;;  %v1772_v34 = vmax.f32 %v770_v17, %v771_v47 }
  0xff   : > { %v491_v18 = vrot.slane %v490_v57, 4  ;;  %v525_v21 = vsel %vm332_vm1, %v524_v51, -inf  ;;  %v594_v37 = vld [vmem:[#allocation2 + $0x6c] sm:$0xf]  ;;  %v840_v16 = vsel %vm332_vm1, %v839_v45, -inf  ;;  %v875_v17 = vsel %vm332_vm1, %v874_v2, -inf }
 0x100   : > { %2283 = vst [vmem:[#allocation27_spill] sm:$0xff] %v1768_v39  ;;  %2284 = vst [vmem:[#allocation28_spill] sm:$0xff] %v1772_v34  ;;  %v1775_v5 = vmax.f32 %v553_v22, %v554_v0  ;;  %v1777_v62 = vmax.f32 %v805_v46, %v806_v54  ;;  %v526_v63 = vrot.slane %v525_v21, 4  ;;  %v778_v56 = vld [vmem:[#allocation2 + $0xf0] sm:$0xf]  ;;  %v841_v20 = vrot.slane %v840_v16, 4 }
 0x101   : > { %v813_v39 = vld [vmem:[#allocation2 + $0xf4] sm:$0xf]  ;;  %v1781_v15 = vmax.f32 %v490_v57, %v491_v18  ;;  %v498_v47 = vld [vmem:[#allocation2 + $0x70] sm:$0xf]  ;;  %v876_v51 = vrot.slane %v875_v17, 4  ;;  %v560_v22 = vsel %vm332_vm1, %v559_v50, -inf }
 0x102   : > { %2285 = vst [vmem:[#allocation29_spill] sm:$0xff] %v1777_v62  ;;  %v1784_v35 = vmax.f32 %v525_v21, %v526_v63  ;;  %v595_v54 = vsel %vm332_vm1, %v594_v37, -inf  ;;  %v533_v46 = vld [vmem:[#allocation2 + $0x74] sm:$0xf]  ;;  %v1789_v0 = vmax.f32 %v840_v16, %v841_v20  ;;  %v561_v62 = vrot.slane %v560_v22, 4 }
 0x103   : > { %v596_v19 = vrot.slane %v595_v54, 4  ;;  %v1791_v18 = vmax.f32 %v875_v17, %v876_v51  ;;  %v779_v2 = vsel %vm332_vm1, %v778_v56, -inf  ;;  %v1795_v63 = vsel %vm332_vm1, %v813_v39, -inf }
 0x104   : > { %2286 = vst [vmem:[#allocation30_spill] sm:$0xff] %v1789_v0  ;;  %v848_v57 = vld [vmem:[#allocation2 + $0xf8] sm:$0xf]  ;;  %2288 = vst [vmem:[#allocation32_spill] sm:$0xff] %v1795_v63  ;;  %v499_v21 = vsel %vm332_vm1, %v498_v47, -inf  ;;  %v1799_v34 = vmax.f32 %v560_v22, %v561_v62  ;;  %v780_v20 = vrot.slane %v779_v2, 4 }
 0x105   : > { %2287 = vst [vmem:[#allocation31_spill] sm:$0xff] %v1791_v18  ;;  %v883_v50 = vld [vmem:[#allocation2 + $0xfc] sm:$0xf]  ;;  %v1801_v45 = vmax.f32 %v595_v54, %v596_v19  ;;  %v568_v16 = vld [vmem:[#allocation2 + $0x78] sm:$0xf]  ;;  %v500_v51 = vrot.slane %v499_v21, 4 }
 0x106   : > { %v603_v12 = vld [vmem:[#allocation2 + $0x7c] sm:$0xf]  ;;  %v1805_v56 = vsel %vm332_vm1, %v533_v46, -inf  ;;  %v849_v39 = vsel %vm332_vm1, %v848_v57, -inf  ;;  %v1809_v18 = vmax.f32 %v779_v2, %v780_v20  ;;  %v1815_v54 = vsel %vm332_vm1, %v883_v50, -inf }
 0x107   : > { %v850_v22 = vrot.slane %v849_v39, 4  ;;  %v1812_v19 = vmax.f32 %v499_v21, %v500_v51  ;;  %2290 = vst [vmem:[#allocation34_spill] sm:$0xff] %v1815_v54  ;;  %v569_v37 = vsel %vm332_vm1, %v568_v16, -inf  ;;  %v1819_v17 = vsel %vm332_vm1, %v603_v12, -inf }
 0x108   : > { %2289 = vst [vmem:[#allocation33_spill] sm:$0xff] %v1809_v18  ;;  %v570_v47 = vrot.slane %v569_v37, 4  ;;  %v2292_v20 = vrot.slane %v1573_v24, 2  ;;  %v2293_v51 = vrot.slane %v1611_v23, 2  ;;  %v353_v16 = vrot.slane %v1645_v36, 2 }
 0x109   : > { %v1821_v46 = vmax.f32 %v849_v39, %v850_v22  ;;  %v2294_v12 = vrot.slane %v1666_v29, 4  ;;  %v2295_v57 = vrot.slane %v1575_v30, 2  ;;  %v2296_v62 = vrot.slane %v1613_v25, 2 }
 0x10a   : > { %v337_v21 = vmax.f32 %v1573_v24, %v2292_v20  ;;  %v345_v50 = vmax.f32 %v1611_v23, %v2293_v51  ;;  %v1835_v22 = vmax.f32 %v569_v37, %v570_v47  ;;  %v388_v20 = vrot.slane %v1647_v41, 2 }
 0x10b   : > { %2291 = vst [vmem:[#allocation35_spill] sm:$0xff] %v1821_v46  ;;  %v361_v39 = vmax.f32 %v1666_v29, %v2294_v12  ;;  %v372_v2 = vmax.f32 %v1575_v30, %v2295_v57  ;;  %v380_v24 = vmax.f32 %v1613_v25, %v2296_v62  ;;  %v354_v54 = vmax.f32 %v1645_v36, %v353_v16 }
 0x10c   : > { %v338_v23 = vrot.slane %v337_v21, 1  ;;  %v346_v51 = vrot.slane %v345_v50, 1  ;;  %v389_v47 = vmax.f32 %v1647_v41, %v388_v20  ;;  %v2297_v12 = vrot.slane %v1669_v33, 4 }
 0x10d   : > { %v362_v46 = vrot.slane %v361_v39, 2  ;;  %v373_v29 = vrot.slane %v372_v2, 1  ;;  %v381_v37 = vrot.slane %v380_v24, 1  ;;  %v355_v25 = vrot.slane %v354_v54, 1 }
 0x10e   : > { %v396_v30 = vmax.f32 %v1669_v33, %v2297_v12  ;;  %v339_v57 = vmax.f32 %v337_v21, %v338_v23  ;;  %v347_v0 = vmax.f32 %v345_v50, %v346_v51  ;;  %v390_v3 = vrot.slane %v389_v47, 1 }
 0x10f   : > { %v363_v62 = vmax.f32 %v361_v39, %v362_v46  ;;  %v374_v63 = vmax.f32 %v372_v2, %v373_v29  ;;  %v382_v18 = vmax.f32 %v380_v24, %v381_v37  ;;  %v356_v36 = vmax.f32 %v354_v54, %v355_v25 }
 0x110   : > { %v397_v10 = vrot.slane %v396_v30, 2  ;;  %v348_v7 = vmax.f32 %v339_v57, %v347_v0  ;;  %v2298_v55 = vrot.slane %v1601_v8, 1  ;;  %v391_v59 = vmax.f32 %v389_v47, %v390_v3 }
 0x111   : > { %v364_v16 = vrot.slane %v363_v62, 1  ;;  %v383_v20 = vmax.f32 %v374_v63, %v382_v18  ;;  %v2299_v33 = vrot.slane %v1640_v27, 1  ;;  %v425_v50 = vrot.slane %v1683_v6, 1 }
 0x112   : > { %v409_v41 = vmax.f32 %v1601_v8, %v2298_v55  ;;  %v398_v4 = vmax.f32 %v396_v30, %v397_v10  ;;  %v357_v46 = vmax.f32 %v348_v7, %v356_v36  ;;  %v2300_v39 = vrot.slane %v1702_v11, 2 }
 0x113   : > { %v417_v21 = vmax.f32 %v1640_v27, %v2299_v33  ;;  %v365_v2 = vmax.f32 %v363_v62, %v364_v16  ;;  %v392_v54 = vmax.f32 %v383_v20, %v391_v59  ;;  %v2301_v8 = vrot.slane %v1606_v13, 1 }
 0x114   : > { %v433_v0 = vmax.f32 %v1702_v11, %v2300_v39  ;;  %v399_v24 = vrot.slane %v398_v4, 1  ;;  %v426_v55 = vmax.f32 %v1683_v6, %v425_v50  ;;  %v2302_v7 = vrot.slane %v1650_v48, 1 }
 0x115   : > { %v418_v23 = vmax.f32 %v409_v41, %v417_v21  ;;  %v444_v3 = vmax.f32 %v1606_v13, %v2301_v8  ;;  %v1863_v10 = vmax.f32 %v357_v46, %v365_v2  ;;  %v460_v51 = vrot.slane %v1687_v42, 1 }
 0x116   : > { %v434_v27 = vrot.slane %v433_v0, 1  ;;  %v452_v18 = vmax.f32 %v1650_v48, %v2302_v7  ;;  %v400_v63 = vmax.f32 %v398_v4, %v399_v24  ;;  %v2303_v59 = vrot.slane %v1704_v9, 2 }
 0x117   : > { %v478_v29 = vrot.slane %v1726_v58, 1  ;;  %v427_v37 = vmax.f32 %v418_v23, %v426_v55  ;;  %v486_v12 = vrot.slane %v1763_v38, 1  ;;  %893 = vst.msk [vmem:[%s1875_s6] sm:$0x1] %vm892_vm2, %v1863_v10  ;;  %v461_v48 = vmax.f32 %v1687_v42, %v460_v51 }
 0x118   : > { %v468_v11 = vmax.f32 %v1704_v9, %v2303_v59  ;;  %v435_v13 = vmax.f32 %v433_v0, %v434_v27  ;;  %v453_v47 = vmax.f32 %v444_v3, %v452_v18  ;;  %v1880_v4 = vmax.f32 %v392_v54, %v400_v63 }
 0x119   : > { %v479_v9 = vmax.f32 %v1726_v58, %v478_v29  ;;  %v487_v57 = vmax.f32 %v1763_v38, %v486_v12  ;;  %v2304_v25 = vrot.slane %v1781_v15, 2  ;;  %v502_v36 = vrot.slane %v1812_v19, 2 }
 0x11a   : > { %v469_v6 = vrot.slane %v468_v11, 1  ;;  %v1884_v30 = vmax.f32 %v427_v37, %v435_v13  ;;  %v462_v16 = vmax.f32 %v453_v47, %v461_v48  ;;  %v2305_v20 = vrot.slane %v1719_v61, 2  ;;  %894 = vst.msk [vmem:[%s1875_s6 + $0x1] sm:$0x1] %vm892_vm2, %v1880_v4 }
 0x11b   : > { %v494_v62 = vmax.f32 %v1781_v15, %v2304_v25  ;;  %v2306_v33 = vrot.slane %v1750_v28, 2  ;;  %v488_v38 = vmax.f32 %v479_v9, %v487_v57  ;;  %v503_v15 = vmax.f32 %v1812_v19, %v502_v36 }
 0x11c   : > { %v470_v41 = vmax.f32 %v468_v11, %v469_v6  ;;  %v512_v42 = vmax.f32 %v1719_v61, %v2305_v20  ;;  %v528_v46 = vrot.slane %v1784_v35, 2  ;;  %895 = vst.msk [vmem:[%s1875_s6 + $0x2] sm:$0x1] %vm892_vm2, %v1884_v30  ;;  %v2307_v39 = vrot.slane %v1805_v56, 4 }
 0x11d   : > { %v520_v58 = vmax.f32 %v1750_v28, %v2306_v33  ;;  %v495_v21 = vrot.slane %v494_v62, 1  ;;  %v504_v54 = vrot.slane %v503_v15, 1  ;;  %v548_v23 = vrot.slane %v1745_v26, 1 }
 0x11e   : > { %v1905_v2 = vmax.f32 %v462_v16, %v470_v41  ;;  %v513_v61 = vrot.slane %v512_v42, 1  ;;  %v536_v28 = vmax.f32 %v1805_v56, %v2307_v39  ;;  %v529_v24 = vmax.f32 %v1784_v35, %v528_v46 }
 0x11f   : > { %v521_v50 = vrot.slane %v520_v58, 1  ;;  %v496_v0 = vmax.f32 %v494_v62, %v495_v21  ;;  %v505_v7 = vmax.f32 %v503_v15, %v504_v54  ;;  %v549_v56 = vmax.f32 %v1745_v26, %v548_v23 }
 0x120   : > { %v925_v19 = vmax.f32 %v1905_v2, %v1884_v30  ;;  %v514_v8 = vmax.f32 %v512_v42, %v513_v61  ;;  %v537_v55 = vrot.slane %v536_v28, 2  ;;  %896 = vst.msk [vmem:[%s1875_s6 + $0x3] sm:$0x1] %vm892_vm2, %v1905_v2  ;;  %v530_v18 = vrot.slane %v529_v24, 1 }
 0x121   : > { %v522_v3 = vmax.f32 %v520_v58, %v521_v50  ;;  %v497_v27 = vmax.f32 %v488_v38, %v496_v0  ;;  %v556_v35 = vrot.slane %v1775_v5, 1  ;;  %v2308_v59 = vrot.slane %v1799_v34, 2 }
 0x122   : > { %v538_v51 = vmax.f32 %v536_v28, %v537_v55  ;;  %v531_v37 = vmax.f32 %v529_v24, %v530_v18  ;;  %v572_v13 = vrot.slane %v1835_v22, 2  ;;  %v2309_v47 = vrot.slane %v1733_v40, 2 }
 0x123   : > { %v523_v63 = vmax.f32 %v514_v8, %v522_v3  ;;  %v564_v11 = vmax.f32 %v1799_v34, %v2308_v59  ;;  %v1922_v29 = vmax.f32 %v497_v27, %v505_v7  ;;  %v557_v26 = vmax.f32 %v1775_v5, %v556_v35 }
 0x124   : > { %v582_v12 = vmax.f32 %v1733_v40, %v2309_v47  ;;  %v539_v48 = vrot.slane %v538_v51, 1  ;;  %v2310_v9 = vrot.slane %v1766_v14, 2  ;;  %v573_v62 = vmax.f32 %v1835_v22, %v572_v13 }
 0x125   : > { %v565_v6 = vrot.slane %v564_v11, 1  ;;  %v926_v25 = vmax.f32 %v925_v19, %v1922_v29  ;;  %v532_v34 = vmax.f32 %v523_v63, %v531_v37  ;;  %897 = vst.msk [vmem:[%s1875_s6 + $0x4] sm:$0x1] %vm892_vm2, %v1922_v29  ;;  %v558_v41 = vmax.f32 %v549_v56, %v557_v26 }
 0x126   : > { %v590_v57 = vmax.f32 %v1766_v14, %v2310_v9  ;;  %v583_v36 = vrot.slane %v582_v12, 1  ;;  %v540_v16 = vmax.f32 %v538_v51, %v539_v48  ;;  %v574_v42 = vrot.slane %v573_v62, 1  ;;  %v2319_v9 = vld [vmem:[#allocation14_spill] sm:$0xff] }
 0x127   : > { %v566_v40 = vmax.f32 %v564_v11, %v565_v6  ;;  %v598_v33 = vrot.slane %v1801_v45, 2  ;;  %v2311_v14 = vrot.slane %v1819_v17, 4  ;;  %v2312_v15 = vrot.slane %v1585_v43, 1 }
 0x128   : > { %v591_v20 = vrot.slane %v590_v57, 1  ;;  %v584_v5 = vmax.f32 %v582_v12, %v583_v36  ;;  %v1941_v38 = vmax.f32 %v532_v34, %v540_v16  ;;  %v575_v61 = vmax.f32 %v573_v62, %v574_v42  ;;  %v2321_v34 = vld [vmem:[#allocation16_spill] sm:$0xff]  ;;  %v2322_v16 = vld [vmem:[#allocation18_spill] sm:$0xff] }
 0x129   : > { %v606_v58 = vmax.f32 %v1819_v17, %v2311_v14  ;;  %v567_v22 = vmax.f32 %v558_v41, %v566_v40  ;;  %v619_v46 = vmax.f32 %v1585_v43, %v2312_v15  ;;  %v599_v50 = vmax.f32 %v1801_v45, %v598_v33  ;;  %v2324_v40 = vld [vmem:[#allocation13_spill] sm:$0xff]  ;;  %v2326_v14 = vld [vmem:[#allocation15_spill] sm:$0xff] }
 0x12a   : > { %v592_v21 = vmax.f32 %v590_v57, %v591_v20  ;;  %v2313_v28 = vrot.slane %v1616_v31, 1  ;;  %v927_v54 = vmax.f32 %v926_v25, %v1941_v38  ;;  %v635_v17 = vrot.slane %v1652_v49, 1  ;;  %898 = vst.msk [vmem:[%s1875_s6 + $0x5] sm:$0x1] %vm892_vm2, %v1941_v38 }
 0x12b   : > { %v607_v39 = vrot.slane %v606_v58, 2  ;;  %v2314_v23 = vrot.slane %v1671_v60, 2  ;;  %v1958_v43 = vmax.f32 %v567_v22, %v575_v61  ;;  %v600_v45 = vrot.slane %v599_v50, 1 }
 0x12c   : > { %v627_v0 = vmax.f32 %v1616_v31, %v2313_v28  ;;  %v593_v24 = vmax.f32 %v584_v5, %v592_v21  ;;  %v636_v31 = vmax.f32 %v1652_v49, %v635_v17  ;;  %v2315_v27 = vrot.slane %v1587_v44, 1  ;;  %v2331_v17 = vld [vmem:[#allocation21_spill] sm:$0xff] }
 0x12d   : > { %v643_v19 = vmax.f32 %v1671_v60, %v2314_v23  ;;  %v608_v8 = vmax.f32 %v606_v58, %v607_v39  ;;  %v2316_v18 = vrot.slane %v1618_v32, 1  ;;  %v928_v60 = vmax.f32 %v927_v54, %v1958_v43  ;;  %899 = vst.msk [vmem:[%s1875_s6 + $0x6] sm:$0x1] %vm892_vm2, %v1958_v43 }
 0x12e   : > { %v628_v3 = vmax.f32 %v619_v46, %v627_v0  ;;  %v654_v7 = vmax.f32 %v1587_v44, %v2315_v27  ;;  %v601_v63 = vmax.f32 %v599_v50, %v600_v45  ;;  %v670_v35 = vrot.slane %v1655_v53, 1  ;;  %v2328_v46 = vld [vmem:[#allocation17_spill] sm:$0xff]  ;;  %v2329_v50 = vld [vmem:[#allocation19_spill] sm:$0xff] }
 0x12f   : > { %v644_v55 = vrot.slane %v643_v19, 1  ;;  %v662_v56 = vmax.f32 %v1618_v32, %v2316_v18  ;;  %v609_v51 = vrot.slane %v608_v8, 1  ;;  %v2317_v37 = vrot.slane %v1673_v52, 2 }
 0x130   : > { %v637_v59 = vmax.f32 %v628_v3, %v636_v31  ;;  %v602_v13 = vmax.f32 %v593_v24, %v601_v63  ;;  %v671_v32 = vmax.f32 %v1655_v53, %v670_v35  ;;  %v2318_v12 = vrot.slane %v1595_v1, 1 }
 0x131   : > { %v645_v49 = vmax.f32 %v643_v19, %v644_v55  ;;  %v663_v11 = vmax.f32 %v654_v7, %v662_v56  ;;  %v678_v44 = vmax.f32 %v1673_v52, %v2317_v37  ;;  %v610_v47 = vmax.f32 %v608_v8, %v609_v51  ;;  %v2332_v55 = vld [vmem:[#allocation25_spill] sm:$0xff]  ;;  %v2333_v7 = vld [vmem:[#allocation28_spill] sm:$0xff] }
 0x132   : > { %v689_v48 = vmax.f32 %v1595_v1, %v2318_v12  ;;  %v2320_v57 = vrot.slane %v2319_v9, 1  ;;  %v705_v62 = vrot.slane %v2321_v34, 1  ;;  %v2323_v41 = vrot.slane %v2322_v16, 2 }
 0x133   : > { %v1979_v26 = vmax.f32 %v637_v59, %v645_v49  ;;  %v679_v6 = vrot.slane %v678_v44, 1  ;;  %v1985_v52 = vmax.f32 %v602_v13, %v610_v47  ;;  %v672_v36 = vmax.f32 %v663_v11, %v671_v32  ;;  %v2336_v13 = vld [vmem:[#allocation20_spill] sm:$0xff] }
 0x134   : > { %v697_v25 = vmax.f32 %v2319_v9, %v2320_v57  ;;  %v713_v53 = vmax.f32 %v2322_v16, %v2323_v41  ;;  %v2325_v20 = vrot.slane %v2324_v40, 1  ;;  %v706_v33 = vmax.f32 %v2321_v34, %v705_v62 }
 0x135   : > { %v680_v42 = vmax.f32 %v678_v44, %v679_v6  ;;  %v2327_v58 = vrot.slane %v2326_v14, 1  ;;  %901 = vst.msk [vmem:[%s1875_s6 + $0x8] sm:$0x1] %vm892_vm2, %v1979_v26  ;;  %v929_v21 = vmax.f32 %v928_v60, %v1985_v52  ;;  %v740_v61 = vrot.slane %v2328_v46, 1  ;;  %900 = vst.msk [vmem:[%s1875_s6 + $0x7] sm:$0x1] %vm892_vm2, %v1985_v52 }
 0x136   : > { %v724_v1 = vmax.f32 %v2324_v40, %v2325_v20  ;;  %v698_v5 = vmax.f32 %v689_v48, %v697_v25  ;;  %v714_v15 = vrot.slane %v713_v53, 1  ;;  %v2330_v39 = vrot.slane %v2329_v50, 2  ;;  %v2335_v60 = vld [vmem:[#allocation33_spill] sm:$0xff]  ;;  %v2338_v6 = vld [vmem:[#allocation24_spill] sm:$0xff] }
 0x137   : > { %v732_v22 = vmax.f32 %v2326_v14, %v2327_v58  ;;  %v2008_v0 = vmax.f32 %v672_v36, %v680_v42  ;;  %v758_v23 = vrot.slane %v2331_v17, 1  ;;  %v930_v19 = vmax.f32 %v929_v21, %v1979_v26  ;;  %v2340_v25 = vld [vmem:[#allocation29_spill] sm:$0xff] }
 0x138   : > { %v748_v28 = vmax.f32 %v2329_v50, %v2330_v39  ;;  %v707_v54 = vmax.f32 %v698_v5, %v706_v33  ;;  %v715_v45 = vmax.f32 %v713_v53, %v714_v15  ;;  %v741_v8 = vmax.f32 %v2328_v46, %v740_v61  ;;  %v2344_v50 = vld [vmem:[#allocation27_spill] sm:$0xff] }
 0x139   : > { %v733_v24 = vmax.f32 %v724_v1, %v732_v22  ;;  %v759_v31 = vmax.f32 %v2331_v17, %v758_v23  ;;  %v766_v27 = vrot.slane %v2332_v55, 1  ;;  %v2334_v18 = vrot.slane %v2333_v7, 2  ;;  %902 = vst.msk [vmem:[%s1875_s6 + $0x9] sm:$0x1] %vm892_vm2, %v2008_v0  ;;  %v2341_v1 = vld [vmem:[#allocation32_spill] sm:$0xff]  ;;  %v2343_v22 = vld [vmem:[#allocation23_spill] sm:$0xff] }
 0x13a   : > { %v749_v3 = vrot.slane %v748_v28, 1  ;;  %v782_v63 = vrot.slane %v2335_v60, 2  ;;  %v931_v51 = vmax.f32 %v930_v19, %v2008_v0  ;;  %v2023_v35 = vmax.f32 %v707_v54, %v715_v45  ;;  %v2347_v19 = vld [vmem:[#allocation35_spill] sm:$0xff] }
 0x13b   : > { %v774_v56 = vmax.f32 %v2333_v7, %v2334_v18  ;;  %v742_v59 = vmax.f32 %v733_v24, %v741_v8  ;;  %v767_v11 = vmax.f32 %v2332_v55, %v766_v27  ;;  %v2337_v47 = vrot.slane %v2336_v13, 2  ;;  %v2345_v24 = vld [vmem:[#allocation30_spill] sm:$0xff] }
 0x13c   : > { %v750_v49 = vmax.f32 %v748_v28, %v749_v3  ;;  %v783_v44 = vmax.f32 %v2335_v60, %v782_v63  ;;  %v932_v12 = vmax.f32 %v931_v51, %v2023_v35  ;;  %v2339_v9 = vrot.slane %v2338_v6, 2  ;;  %903 = vst.msk [vmem:[%s1875_s6 + $0xa] sm:$0x1] %vm892_vm2, %v2023_v35 }
 0x13d   : > { %v775_v37 = vrot.slane %v774_v56, 1  ;;  %v792_v32 = vmax.f32 %v2336_v13, %v2337_v47  ;;  %v808_v34 = vrot.slane %v2340_v25, 2  ;;  %v768_v62 = vmax.f32 %v759_v31, %v767_v11  ;;  %v2350_v11 = vld [vmem:[#allocation26_spill] sm:$0xff] }
 0x13e   : > { %v2031_v48 = vmax.f32 %v742_v59, %v750_v49  ;;  %v800_v57 = vmax.f32 %v2338_v6, %v2339_v9  ;;  %v784_v16 = vrot.slane %v783_v44, 1  ;;  %v2342_v42 = vrot.slane %v2341_v1, 4 }
 0x13f   : > { %v776_v36 = vmax.f32 %v774_v56, %v775_v37  ;;  %v793_v41 = vrot.slane %v792_v32, 1  ;;  %v809_v20 = vmax.f32 %v2340_v25, %v808_v34  ;;  %v828_v21 = vrot.slane %v2343_v22, 1  ;;  %v2348_v56 = vld [vmem:[#allocation22_spill] sm:$0xff] }
 0x140   : > { %v933_v53 = vmax.f32 %v932_v12, %v2031_v48  ;;  %v801_v40 = vrot.slane %v800_v57, 1  ;;  %v816_v5 = vmax.f32 %v2341_v1, %v2342_v42  ;;  %904 = vst.msk [vmem:[%s1875_s6 + $0xb] sm:$0x1] %vm892_vm2, %v2031_v48  ;;  %v785_v14 = vmax.f32 %v783_v44, %v784_v16  ;;  %v2352_v12 = vld [vmem:[#allocation31_spill] sm:$0xff]  ;;  %v2353_v25 = vld [vmem:[#allocation34_spill] sm:$0xff] }
 0x141   : > { %v777_v33 = vmax.f32 %v768_v62, %v776_v36  ;;  %v794_v58 = vmax.f32 %v792_v32, %v793_v41  ;;  %v810_v46 = vrot.slane %v809_v20, 1  ;;  %v836_v39 = vrot.slane %v2344_v50, 1 }
 0x142   : > { %v802_v15 = vmax.f32 %v800_v57, %v801_v40  ;;  %v817_v61 = vrot.slane %v816_v5, 2  ;;  %v829_v54 = vmax.f32 %v2343_v22, %v828_v21  ;;  %v2346_v17 = vrot.slane %v2345_v24, 2 }
 0x143   : > { %v786_v28 = vmax.f32 %v777_v33, %v785_v14  ;;  %v852_v45 = vrot.slane %v2347_v19, 2  ;;  %v811_v3 = vmax.f32 %v809_v20, %v810_v46  ;;  %v837_v55 = vmax.f32 %v2344_v50, %v836_v39 }
 0x144   : > { %v844_v23 = vmax.f32 %v2345_v24, %v2346_v17  ;;  %v803_v8 = vmax.f32 %v794_v58, %v802_v15  ;;  %v818_v31 = vmax.f32 %v816_v5, %v817_v61  ;;  %v2349_v60 = vrot.slane %v2348_v56, 2 }
 0x145   : > { %v934_v27 = vmax.f32 %v933_v53, %v786_v28  ;;  %v853_v18 = vmax.f32 %v2347_v19, %v852_v45  ;;  %905 = vst.msk [vmem:[%s1875_s6 + $0xc] sm:$0x1] %vm892_vm2, %v786_v28  ;;  %v838_v49 = vmax.f32 %v829_v54, %v837_v55  ;;  %v2351_v37 = vrot.slane %v2350_v11, 2 }
 0x146   : > { %v845_v7 = vrot.slane %v844_v23, 1  ;;  %v862_v63 = vmax.f32 %v2348_v56, %v2349_v60  ;;  %v812_v51 = vmax.f32 %v803_v8, %v811_v3  ;;  %v819_v59 = vrot.slane %v818_v31, 1 }
 0x147   : > { %v870_v44 = vmax.f32 %v2350_v11, %v2351_v37  ;;  %v854_v47 = vrot.slane %v853_v18, 1  ;;  %v878_v6 = vrot.slane %v2352_v12, 2  ;;  %v2354_v34 = vrot.slane %v2353_v25, 4 }
 0x148   : > { %v846_v13 = vmax.f32 %v844_v23, %v845_v7  ;;  %v863_v32 = vrot.slane %v862_v63, 1  ;;  %v820_v9 = vmax.f32 %v818_v31, %v819_v59  ;;  %v909_v36 = vmax.f32 %v1863_v10, %v1880_v4 }
 0x149   : > { %v871_v57 = vrot.slane %v870_v44, 1  ;;  %v886_v62 = vmax.f32 %v2353_v25, %v2354_v34  ;;  %v855_v41 = vmax.f32 %v853_v18, %v854_v47  ;;  %v879_v40 = vmax.f32 %v2352_v12, %v878_v6 }
 0x14a   : > { %v847_v16 = vmax.f32 %v838_v49, %v846_v13  ;;  %v864_v53 = vmax.f32 %v862_v63, %v863_v32  ;;  %v821_v20 = vmax.f32 %v812_v51, %v820_v9  ;;  %v910_v5 = vmax.f32 %v909_v36, %v1922_v29 }
 0x14b   : > { %v872_v1 = vmax.f32 %v870_v44, %v871_v57  ;;  %v887_v42 = vrot.slane %v886_v62, 2  ;;  %v880_v14 = vrot.slane %v879_v40, 1  ;;  %v912_v58 = vmax.f32 %v1884_v30, %v1905_v2 }
 0x14c   : > { %v856_v33 = vmax.f32 %v847_v16, %v855_v41  ;;  %v915_v10 = vmax.f32 %v1979_v26, %v2008_v0  ;;  %v935_v4 = vmax.f32 %v934_v27, %v821_v20  ;;  %906 = vst.msk [vmem:[%s1875_s6 + $0xd] sm:$0x1] %vm892_vm2, %v821_v20  ;;  %v911_v21 = vmax.f32 %v910_v5, %v1941_v38 }
 0x14d   : > { %v888_v22 = vmax.f32 %v886_v62, %v887_v42  ;;  %v881_v15 = vmax.f32 %v879_v40, %v880_v14  ;;  %v913_v29 = vmax.f32 %v912_v58, %v1958_v43  ;;  %v873_v61 = vmax.f32 %v864_v53, %v872_v1 }
 0x14e   : > { %907 = vst.msk [vmem:[%s1875_s6 + $0xe] sm:$0x1] %vm892_vm2, %v856_v33  ;;  %v916_v46 = vmax.f32 %v915_v10, %v786_v28  ;;  %v918_v2 = vmax.f32 %v2023_v35, %v2031_v48  ;;  %921 = vst.msk [vmem:[%s221_s28] sm:$0x1] %vm892_vm2, %v911_v21  ;;  %v936_v43 = vmax.f32 %v935_v4, %v856_v33 }
 0x14f   : > { %v889_v30 = vrot.slane %v888_v22, 1  ;;  %v914_v38 = vmax.f32 %v913_v29, %v1985_v52  ;;  %v882_v0 = vmax.f32 %v873_v61, %v881_v15 }
 0x150   : > { %v917_v26 = vmax.f32 %v916_v46, %v821_v20  ;;  %v919_v39 = vmax.f32 %v918_v2, %v856_v33 }
 0x151   : > { %v890_v50 = vmax.f32 %v888_v22, %v889_v30  ;;  %922 = vst.msk [vmem:[%s221_s28 + $0x1] sm:$0x1] %vm892_vm2, %v914_v38 }
 0x152   : > { %923 = vst.msk [vmem:[%s221_s28 + $0x2] sm:$0x1] %vm892_vm2, %v917_v26 }
 0x153   : > { %v891_v52 = vmax.f32 %v882_v0, %v890_v50 }
 0x155   : > { %v937_v35 = vmax.f32 %v936_v43, %v891_v52  ;;  %908 = vst.msk [vmem:[%s1875_s6 + $0xf] sm:$0x1] %vm892_vm2, %v891_v52  ;;  %v920_v48 = vmax.f32 %v919_v39, %v891_v52  ;;  %s2124_s6 = scalar_lea.sflag [#allocation8], %s944_s9 }
 0x157   : > { %v938_v28 = vmax.f32 %v937_v35, %v909_v36  ;;  %924 = vst.msk [vmem:[%s221_s28 + $0x3] sm:$0x1] %vm892_vm2, %v920_v48 }
 0x158   : > { %1278 = shalt.err (!%p1275_p5)
}
 0x159   : > { %s1279_s18 = scalar_lea.hbm %s2093_s11, 64  ;;  %s1283_s29 = scalar_lea.hbm %s2222_s2, 128 }
 0x15a   : > { %p1280_p4 = scmp.ne.s32.totalorder %s2093_s11, %s1279_s18  ;;  %p1284_p12 = scmp.lt.u32.totalorder %s2093_s11, %s2222_s2 }
 0x15b   : > { %p1285_p1 = scmp.lt.u32.totalorder %s1283_s29, %s1279_s18  ;;  %p1287_p8 = scmp.lt.u32.totalorder %s1279_s18, %s2093_s11 }
 0x15c   : > { %p1281_p7 = pnand %p1280_p4, %p2355_p9 }
 0x15d   : > { %p1286_p3 = por %p1285_p1, %p1284_p12 }
 0x15e   : > { %p1282_p10 = pneg %p1281_p7 }
 0x15f   : > { %p1288_p11 = por %p1287_p8, %p1286_p3 }
 0x161   : > { %p1289_p0 = pnand %p1288_p11, %p1282_p10 }
 0x163   : > { %1292 = shalt.err (!%p1289_p0)
}
 0x164   : > { %1161 = dma.vmem_to_hbm [thread:$0]  (%p2355_p9), %s2099_s4, 64, %s2093_s11, %s2124_s6  }
 0x165   : > { %s2356_s30 = scalar_lea.vmem [#allocation6], %s1555_s23  ;;  %s1293_s21 = scalar_lea.vmem %s2112_s22, 256 }
 0x166   : > { %939 = vst.msk [vmem:[%s2356_s30] sm:$0x1] %vm892_vm2, %v938_v28  ;;  %p1294_p6 = scmp.ne.s32.totalorder %s2112_s22, %s1293_s21  ;;  %s1413_s8 = smov [#allocation9]  }
 0x167   : > { %s1297_s10 = sshll.u32 %s1413_s8, 4  ;;  %s1298_s10 = int_to_ptr.vmem [resolvable:$false] %s1297_s10 }
 0x168   : > { %p1295_p13 = pnand %p1294_p6, %p2355_p9  ;;  %s1299_s18 = scalar_lea.vmem %s1298_s10, 512 }
 0x169   : > { %p1300_p5 = scmp.lt.s32.totalorder %s2112_s22, %s1298_s10  ;;  %p1301_p4 = scmp.lt.s32.totalorder %s1299_s18, %s1293_s21 }
 0x16a   : > { %p1296_p2 = pneg %p1295_p13 }
 0x16b   : > { %p1302_p7 = por %p1301_p4, %p1300_p5 }
 0x16d   : > { %p1303_p10 = pnand %p1302_p7, %p1296_p2 }
 0x16f   : > { %1306 = shalt.err (!%p1303_p10)
}
 0x170   : > { %s1307_s4 = scalar_lea.hbm %s2110_s5, 256  ;;  %s1311_s28 = scalar_lea.hbm %s2223_s3, 512 }
 0x171   : > { %p1308_p12 = scmp.ne.s32.totalorder %s2110_s5, %s1307_s4  ;;  %p1312_p8 = scmp.lt.u32.totalorder %s2110_s5, %s2223_s3 }
 0x172   : > { %p1313_p11 = scmp.lt.u32.totalorder %s1311_s28, %s1307_s4  ;;  %p1315_p6 = scmp.lt.u32.totalorder %s1307_s4, %s2110_s5 }
 0x173   : > { %p1309_p1 = pnand %p1308_p12, %p2355_p9 }
 0x174   : > { %p1314_p0 = por %p1313_p11, %p1312_p8 }
 0x175   : > { %p1310_p3 = pneg %p1309_p1 }
 0x176   : > { %p1316_p13 = por %p1315_p6, %p1314_p0 }
 0x178   : > { %p1317_p2 = pnand %p1316_p13, %p1310_p3 }
 0x17a   : > { %1320 = shalt.err (!%p1317_p2)
}
 0x17b   : > { %s1414_s15 = smov 128   ;;  %s1415_s30 = smov 8  }
 0x17c   : > { %1162 = dma.vmem_to_hbm [thread:$0]  (%p2355_p9), %s2112_s22, 256, %s2110_s5, %s2124_s6, %s1414_s15, %s1414_s15, %s1415_s30  }
 0x17d   : > { %s941_s21 = scalar_lea.sflag [#allocation5], %s1555_s23  ;;  %s1321_s8 = scalar_lea.vmem %s2120_s24, 16 }
 0x17e   : > { %p1322_p5 = scmp.ne.s32.totalorder %s2120_s24, %s1321_s8  ;;  %s1416_s10 = smov [#allocation6]  }
 0x17f   : > { %s1325_s18 = sshll.u32 %s1416_s10, 4  ;;  %s1326_s18 = int_to_ptr.vmem [resolvable:$false] %s1325_s18 }
 0x180   : > { %p1323_p4 = pnand %p1322_p5, %p2355_p9  ;;  %s1327_s4 = scalar_lea.vmem %s1326_s18, 32 }
 0x181   : > { %p1328_p10 = scmp.lt.s32.totalorder %s2120_s24, %s1326_s18  ;;  %p1329_p12 = scmp.lt.s32.totalorder %s1327_s4, %s1321_s8 }
 0x182   : > { %p1324_p7 = pneg %p1323_p4 }
 0x183   : > { %p1330_p1 = por %p1329_p12, %p1328_p10 }
 0x185   : > { %p1331_p3 = pnand %p1330_p1, %p1324_p7 }
 0x187   : > { %1334 = shalt.err (!%p1331_p3)
}
 0x188   : > { %s1335_s23 = scalar_lea.hbm %s2118_s19, 16  ;;  %s1339_s6 = scalar_lea.hbm %s2221_s1, 32 }
 0x189   : > { %p1336_p8 = scmp.ne.s32.totalorder %s2118_s19, %s1335_s23  ;;  %p1340_p6 = scmp.lt.u32.totalorder %s2118_s19, %s2221_s1 }
 0x18a   : > { %p1341_p13 = scmp.lt.u32.totalorder %s1339_s6, %s1335_s23  ;;  %p1343_p5 = scmp.lt.u32.totalorder %s1335_s23, %s2118_s19 }
 0x18b   : > { %p1337_p11 = pnand %p1336_p8, %p2355_p9 }
 0x18c   : > { %p1342_p2 = por %p1341_p13, %p1340_p6 }
 0x18d   : > { %p1338_p0 = pneg %p1337_p11 }
 0x18e   : > { %p1344_p4 = por %p1343_p5, %p1342_p2 }
 0x190   : > { %p1345_p7 = pnand %p1344_p4, %p1338_p0 }
 0x192   : > { %1348 = shalt.err (!%p1345_p7)
}
 0x193   : > { %1160 = dma.vmem_to_hbm [thread:$0]  (%p2355_p9), %s2120_s24, 16, %s2118_s19, %s941_s21  }
 0x194 PF: > { %s1007_s28 = sand.u32 1, %s1387_s12   ;;  %p2357_p10 = scmp.ne.s32.totalorder %s2266_s27, 0 }
 0x195   : > { %p2358_p12 = scmp.ge.s32.totalorder %s1407_s17, 2  ;;  %s1008_s29 = scalar_lea.sflag [#allocation5], %s1007_s28 }
 0x197   : > { %p1171_p1 = pnand %p2358_p12, %p2357_p10 }
 0x199   : > { %1378 = dma.done.wait (!%p1171_p1), %s1008_s29, 16  }
 0x19a   : > { %1380 = vsyncadd (!%p1171_p1), %s1008_s29, 4294967280  ;;  %s2359_s7 = sadd.s32 4294967294, %s1407_s17  }
 0x19b   : > { %s1015_s15 = sand.u32 1, %s2359_s7  }
 0x19c   : > { %s1016_s30 = scalar_lea.sflag [#allocation8], %s1015_s15 }
 0x19d   : > { %1382 = dma.done.wait (!%p1171_p1), %s1016_s30, 320  }
 0x19e   : > { %1384 = vsyncadd (!%p1171_p1), %s1016_s30, 4294966976  ;;  %s23_s17 = sadd.s32 1, %s1407_s17   ;;  %s2360_s12 = smov %s1391_s13 }
 0x19f   : > { %p20_p9 = scmp.ge.s32.totalorder %s23_s17, 4   ;;  %s2361_s13 = smov %s1395_s14 }
 0x1a0   : > { %s2362_s14 = smov %s1499_s26  ;;  %s2363_s15 = smov %s1403_s16 }
 0x1a1   : > { %s2364_s16 = smov %s2366_s20  ;;  %22 = sbr.rel (!%p20_p9) target bundleno = 8 (0x8), region = 101 }
 0x1a8   :  { %1030 = vsyncpa [#allocation4], 1 }
 0x1a9   :  { %1032 = vsyncpa [#allocation4 + $0x1], 1 }
 0x1aa   :  { %1033 = vsyncpa [#allocation5], 1 }
 0x1ab   :  { %1035 = vsyncpa [#allocation5 + $0x1], 1 }
 0x1ac   :  { %1036 = vsyncpa [#allocation8], 1 }
 0x1ad   :  { %1038 = vsyncpa [#allocation8 + $0x1], 1 }

</bundles_post_ra>
